<compile_context>
chip_gen: v5e
topology: v5e:2x2
jax: 0.10.0
libtpu: 0.0.40
codegen_flags: <defaults>
</compile_context>

<pallas_src>
import functools

import jax
import jax.numpy as jnp
from jax.experimental import pallas as pl
from jax.experimental.pallas import tpu as pltpu

EPS = 1e-3
_FAST_PATH_BYTES = 8 * 1024 * 1024  # single-launch path when x + 2*y fit well in VMEM


# ---------------------------------------------------------------------------------------
# Pass 1: per-tile x-side moments (tile mean of x, per-tile-centered Gram matrix Xc @ Xc^T)
# ---------------------------------------------------------------------------------------
def _xmoments_kernel(x_ref, mu_ref, m2_ref, *, ts, hw):
    x = x_ref[...].astype(jnp.float32)                       # (Cin, TS), lane axis = spatial
    if hw % ts != 0:
        # Ragged last tile: mask out-of-bounds lanes (OOB reads are unspecified values).
        rem = hw - pl.program_id(1) * ts
        valid = jnp.minimum(rem, ts)
        lane = jax.lax.broadcasted_iota(jnp.int32, x.shape, 1)
        mask = lane < valid
        x = jnp.where(mask, x, 0.0)
        cnt = valid.astype(jnp.float32)
        mu = jnp.sum(x, axis=1, keepdims=True) / cnt          # (Cin, 1) tile mean
        xc = jnp.where(mask, x - mu, 0.0)
    else:
        mu = jnp.sum(x, axis=1, keepdims=True) * (1.0 / ts)
        xc = x - mu
    # Centered second moment via the MXU: contraction over the lane (spatial) dim.
    m2 = jax.lax.dot_general(xc, xc, (((1,), (1,)), ((), ())),
                             preferred_element_type=jnp.float32)   # (Cin, Cin)
    mu_ref[...] = mu
    m2_ref[...] = m2


# ---------------------------------------------------------------------------------------
# Pass 2: recompute the 1x1 conv tile and apply the folded BN affine (y*scale + shift).
# ---------------------------------------------------------------------------------------
def _norm_kernel(x_ref, w_ref, scale_ref, shift_ref, o_ref):
    y = jnp.dot(w_ref[...], x_ref[...], preferred_element_type=jnp.float32)  # (Cout, TS)
    o_ref[...] = (y * scale_ref[...] + shift_ref[...]).astype(o_ref.dtype)


# ---------------------------------------------------------------------------------------
# Small-shape fast path: one launch, y kept in VMEM scratch, stats reduced in-kernel.
# ---------------------------------------------------------------------------------------
def _fused_small_kernel(x_ref, w_ref, g_ref, b_ref, o_ref, y_ref, *, eps):
    n = x_ref.shape[0]
    hw = x_ref.shape[2]
    cout = w_ref.shape[0]
    w = w_ref[...].astype(jnp.float32)
    total = float(n * hw)

    s = jnp.zeros((cout, 1), jnp.float32)
    for i in range(n):                                        # N is small by construction
        y = jnp.dot(w, x_ref[i].astype(jnp.float32), preferred_element_type=jnp.float32)
        y_ref[i] = y
        s = s + jnp.sum(y, axis=1, keepdims=True)
    mean = s * (1.0 / total)

    ss = jnp.zeros((cout, 1), jnp.float32)
    for i in range(n):                                        # centered pass (no cancellation)
        c = y_ref[i] - mean
        ss = ss + jnp.sum(c * c, axis=1, keepdims=True)
    var = ss * (1.0 / total)

    inv_std = jax.lax.rsqrt(var + eps)
    scale = g_ref[...] * inv_std
    shift = b_ref[...] - mean * scale
    for i in range(n):
        o_ref[i] = (y_ref[i] * scale + shift).astype(o_ref.dtype)


# ---------------------------------------------------------------------------------------
# Spatial tiler: multiple of 128 (or full extent when hw <= 128), bounded by `cap`,
# prefers exact divisors, guarantees >= min_tiles grid steps, never returns ts = hw >> cap.
# ---------------------------------------------------------------------------------------
def _pick_spatial_tile(hw, min_tiles=1, cap=4096):
    if hw <= 128:
        return hw                                            # single full-extent block
    limit = min(cap, (hw // 128) * 128)
    if min_tiles > 1 and limit >= hw:
        limit = max(128, ((hw - 1) // 128) * 128)            # force >= 2 tiles
    best_div = 0
    m = 128
    while m <= limit:
        if hw % m == 0:
            best_div = m
        m += 128
    if best_div and (best_div >= 512 or best_div == limit):
        return best_div                                      # exact division, no ragged tile
    return limit                                             # cdiv grid, masked last tile


def conv1x1_bn(x_nchw, w_oihw, gamma, beta, *, use_fast_path=None):
    """x_nchw: (N, Cin, H, W), w_oihw: (Cout, Cin, 1, 1), gamma/beta: (Cout,)."""
    n, cin, h, w = x_nchw.shape
    cout = w_oihw.shape[0]
    hw = h * w

    # Contiguity-preserving reshapes only -- no transposes, no extra HBM traffic.
    x3 = x_nchw.reshape(n, cin, hw)
    w2 = w_oihw.reshape(cout, cin)
    g32 = gamma.astype(jnp.float32).reshape(cout, 1)
    b32 = beta.astype(jnp.float32).reshape(cout, 1)

    if use_fast_path is None:
        use_fast_path = 4 * n * hw * (cin + 2 * cout) <= _FAST_PATH_BYTES

    # ----------------------------- small-shape fast path --------------------------------
    if use_fast_path:
        out3 = pl.pallas_call(
            functools.partial(_fused_small_kernel, eps=EPS),
            out_shape=jax.ShapeDtypeStruct((n, cout, hw), x_nchw.dtype),
            grid_spec=pltpu.PrefetchScalarGridSpec(
                num_scalar_prefetch=0,
                grid=(1,),
                in_specs=[
                    pl.BlockSpec((n, cin, hw), lambda i: (0, 0, 0)),
                    pl.BlockSpec((cout, cin), lambda i: (0, 0)),
                    pl.BlockSpec((cout, 1), lambda i: (0, 0)),
                    pl.BlockSpec((cout, 1), lambda i: (0, 0)),
                ],
                out_specs=pl.BlockSpec((n, cout, hw), lambda i: (0, 0, 0)),
                scratch_shapes=[pltpu.VMEM((n, cout, hw), jnp.float32)],
            ),
            compiler_params=pltpu.CompilerParams(
                dimension_semantics=("arbitrary",),
            ),
        )(x3, w2, g32, b32)
        return out3.reshape(n, cout, h, w)

    # ------------------------------- tiled two-pass path --------------------------------
    min_tiles = 1 if n >= 2 else 2            # keep both v7x TensorCores busy when N == 1
    ts = _pick_spatial_tile(hw, min_tiles=min_tiles, cap=4096)
    nt = pl.cdiv(hw, ts)

    # ---- pass 1: per-tile x moments (mean + centered Gram), Cin-only HBM reads ----------
    mu_parts, m2_parts = pl.pallas_call(
        functools.partial(_xmoments_kernel, ts=ts, hw=hw),
        out_shape=(
            jax.ShapeDtypeStruct((n, nt, cin, 1), jnp.float32),
            jax.ShapeDtypeStruct((n, nt, cin, cin), jnp.float32),
        ),
        grid_spec=pltpu.PrefetchScalarGridSpec(
            num_scalar_prefetch=0,
            grid=(n, nt),
            in_specs=[pl.BlockSpec((None, cin, ts), lambda b, t: (b, 0, t))],
            out_specs=(
                pl.BlockSpec((None, None, cin, 1), lambda b, t: (b, t, 0, 0)),
                pl.BlockSpec((None, None, cin, cin), lambda b, t: (b, t, 0, 0)),
            ),
        ),
        compiler_params=pltpu.CompilerParams(
            dimension_semantics=("parallel", "parallel"),
        ),
    )(x3)

    # ---- merge x moments (count-weighted Chan formula), derive y stats, fold BN affine --
    counts = jnp.asarray([min(ts, hw - i * ts) for i in range(nt)], dtype=jnp.float32)
    cnt_t = jnp.tile(counts, (n,))                               # (n*nt,)
    mu_t = mu_parts.reshape(n * nt, cin)
    m2_t = m2_parts.reshape(n * nt, cin, cin)
    total = float(n * hw)

    mu_x = jnp.sum(mu_t * cnt_t[:, None], axis=0) / total        # (Cin,)
    d = mu_t - mu_x[None, :]
    m2_x = jnp.sum(m2_t, axis=0) + jnp.einsum("t,ti,tj->ij", cnt_t, d, d)
    cov_x = m2_x / total                                          # biased Cov(x)

    w2f = w2.astype(jnp.float32)
    mean_y = w2f @ mu_x                                           # (Cout,)
    var_y = jnp.einsum("ci,ij,cj->c", w2f, cov_x, w2f)            # (Cout,), biased (train BN)
    inv_std = jax.lax.rsqrt(var_y + EPS)

    scale = (g32[:, 0] * inv_std).reshape(cout, 1)                # folded BN affine
    shift = (b32[:, 0] - mean_y * g32[:, 0] * inv_std).reshape(cout, 1)

    # ---- pass 2: conv + folded affine, lane-dense NCHW stores (output-write bound) ------
    out3 = pl.pallas_call(
        _norm_kernel,
        out_shape=jax.ShapeDtypeStruct((n, cout, hw), x_nchw.dtype),
        grid_spec=pltpu.PrefetchScalarGridSpec(
            num_scalar_prefetch=0,
            grid=(n, nt),
            in_specs=[
                pl.BlockSpec((None, cin, ts), lambda b, t: (b, 0, t)),
                pl.BlockSpec((cout, cin), lambda b, t: (0, 0)),
                pl.BlockSpec((cout, 1), lambda b, t: (0, 0)),
                pl.BlockSpec((cout, 1), lambda b, t: (0, 0)),
            ],
            out_specs=pl.BlockSpec((None, cout, ts), lambda b, t: (b, 0, t)),
        ),
        compiler_params=pltpu.CompilerParams(
            dimension_semantics=("parallel", "parallel"),
        ),
    )(x3, w2, scale, shift)

    return out3.reshape(n, cout, h, w)


def _reference(x_nchw, w_oihw, gamma, beta):
    # pure-JAX reference (training-mode BatchNorm semantics)
    n, cin, h, w = x_nchw.shape
    cout = w_oihw.shape[0]
    w2 = w_oihw.reshape(cout, cin).astype(jnp.float32)
    x3 = x_nchw.reshape(n, cin, h * w).astype(jnp.float32)
    y = jnp.einsum("oc,ncp->nop", w2, x3)                         # (N, Cout, HW)
    mean = jnp.mean(y, axis=(0, 2), keepdims=True)
    var = jnp.mean((y - mean) ** 2, axis=(0, 2), keepdims=True)
    out = (y - mean) * jax.lax.rsqrt(var + EPS) * gamma[None, :, None] + beta[None, :, None]
    return out.reshape(n, cout, h, w).astype(x_nchw.dtype)


if __name__ == "__main__":
    key = jax.random.PRNGKey(0)
    k_x, k_w, k_g, k_b, k_x2 = jax.random.split(key, 5)

    CIN, COUT = 32, 192

    # ---- small shapes (fast path: single fused launch) ---------------------------------
    N, H, W = 2, 16, 16
    x = jax.random.normal(k_x, (N, CIN, H, W), dtype=jnp.float32)
    conv_w = jax.random.normal(k_w, (COUT, CIN, 1, 1), dtype=jnp.float32) * (1.0 / jnp.sqrt(CIN))
    gamma = 1.0 + 0.1 * jax.random.normal(k_g, (COUT,), dtype=jnp.float32)
    beta = 0.1 * jax.random.normal(k_b, (COUT,), dtype=jnp.float32)

    out = jax.block_until_ready(conv1x1_bn(x, conv_w, gamma, beta))
    ref = _reference(x, conv_w, gamma, beta)
    assert out.shape == (N, COUT, H, W), out.shape
    err = float(jnp.max(jnp.abs(out - ref)))
    assert jnp.allclose(out, ref, atol=1e-4, rtol=1e-4), err

    # ---- module's native shape (tiled two-pass path) -----------------------------------
    x2 = jax.random.normal(k_x2, (1, CIN, 112, 112), dtype=jnp.float32)
    out2 = jax.block_until_ready(conv1x1_bn(x2, conv_w, gamma, beta, use_fast_path=False))
    ref2 = _reference(x2, conv_w, gamma, beta)
    err2 = float(jnp.max(jnp.abs(out2 - ref2)))
    assert jnp.allclose(out2, ref2, atol=1e-4, rtol=1e-4), err2

    print("KERNEL_OK")
</pallas_src>

<mosaic_0001>
module attributes {stable_mosaic.version = 11 : i64} {
  func.func @_fused_small_kernel(%arg0: i32, %arg1: memref<2x32x256xf32, #tpu.memory_space<vmem>>, %arg2: memref<192x32xf32, #tpu.memory_space<vmem>>, %arg3: memref<192x1xf32, #tpu.memory_space<vmem>>, %arg4: memref<192x1xf32, #tpu.memory_space<vmem>>, %arg5: memref<2x192x256xf32, #tpu.memory_space<vmem>>, %arg6: memref<2x192x256xf32, #tpu.memory_space<vmem>>) attributes {dimension_semantics = [#tpu.dimension_semantics<arbitrary>], iteration_bounds = array<i64: 1>, scalar_prefetch = 0 : i64, scratch_operands = 1 : i64, tpu.core_type = #tpu.core_type<tc>, window_params = [{pipeline_mode = #tpu.pipeline_mode<synchronous>, transform_indices = @transform_0, window_bounds = array<i64: 2, 32, 256>}, {pipeline_mode = #tpu.pipeline_mode<synchronous>, transform_indices = @transform_1, window_bounds = array<i64: 192, 32>}, {pipeline_mode = #tpu.pipeline_mode<synchronous>, transform_indices = @transform_2, window_bounds = array<i64: 192, 1>}, {pipeline_mode = #tpu.pipeline_mode<synchronous>, transform_indices = @transform_3, window_bounds = array<i64: 192, 1>}, {pipeline_mode = #tpu.pipeline_mode<synchronous>, transform_indices = @transform_4, window_bounds = array<i64: 2, 192, 256>}]} {
    %c0 = arith.constant 0 : index
    %c0_0 = arith.constant 0 : index
    %0 = vector.load %arg2[%c0, %c0_0] : memref<192x32xf32, #tpu.memory_space<vmem>>, vector<192x32xf32>
    %cst = arith.constant 0.000000e+00 : f32
    %1 = vector.broadcast %cst : f32 to vector<192x1xf32>
    %c0_1 = arith.constant 0 : index
    %c0_2 = arith.constant 0 : index
    %c0_3 = arith.constant 0 : index
    %2 = vector.load %arg1[%c0_1, %c0_2, %c0_3] : memref<2x32x256xf32, #tpu.memory_space<vmem>>, vector<1x32x256xf32>
    %3 = vector.shape_cast %2 : vector<1x32x256xf32> to vector<32x256xf32>
    %cst_4 = arith.constant dense<0.000000e+00> : vector<192x256xf32>
    %4 = tpu.matmul %0, %3, %cst_4 {dimension_numbers = #tpu.dot_dimension_numbers<[1], [0], [0], [1], [0, 0, 1, 1], [], []>} : vector<192x32xf32>, vector<32x256xf32>, vector<192x256xf32> -> vector<192x256xf32>
    %c0_5 = arith.constant 0 : index
    %c0_6 = arith.constant 0 : index
    %c0_7 = arith.constant 0 : index
    %5 = vector.load %arg6[%c0_5, %c0_6, %c0_7] : memref<2x192x256xf32, #tpu.memory_space<vmem>>, vector<1x192x256xf32>
    %6 = vector.shape_cast %5 : vector<1x192x256xf32> to vector<192x256xf32>
    %7 = vector.shape_cast %4 : vector<192x256xf32> to vector<1x192x256xf32>
    tpu.vector_store %arg6[%c0_5, %c0_6, %c0_7], %7 {strides = array<i32>} : memref<2x192x256xf32, #tpu.memory_space<vmem>>, vector<1x192x256xf32>,
    %cst_8 = arith.constant dense<0.000000e+00> : vector<192xf32>
    %8 = vector.multi_reduction <add>, %4, %cst_8 [1] : vector<192x256xf32> to vector<192xf32>
    %9 = vector.shape_cast %8 : vector<192xf32> to vector<192x1xf32>
    %10 = arith.addf %1, %9 : vector<192x1xf32>
    %c1 = arith.constant 1 : index
    %c0_9 = arith.constant 0 : index
    %c0_10 = arith.constant 0 : index
    %11 = vector.load %arg1[%c1, %c0_9, %c0_10] : memref<2x32x256xf32, #tpu.memory_space<vmem>>, vector<1x32x256xf32>
    %12 = vector.shape_cast %11 : vector<1x32x256xf32> to vector<32x256xf32>
    %cst_11 = arith.constant dense<0.000000e+00> : vector<192x256xf32>
    %13 = tpu.matmul %0, %12, %cst_11 {dimension_numbers = #tpu.dot_dimension_numbers<[1], [0], [0], [1], [0, 0, 1, 1], [], []>} : vector<192x32xf32>, vector<32x256xf32>, vector<192x256xf32> -> vector<192x256xf32>
    %c1_12 = arith.constant 1 : index
    %c0_13 = arith.constant 0 : index
    %c0_14 = arith.constant 0 : index
    %14 = vector.load %arg6[%c1_12, %c0_13, %c0_14] : memref<2x192x256xf32, #tpu.memory_space<vmem>>, vector<1x192x256xf32>
    %15 = vector.shape_cast %14 : vector<1x192x256xf32> to vector<192x256xf32>
    %16 = vector.shape_cast %13 : vector<192x256xf32> to vector<1x192x256xf32>
    tpu.vector_store %arg6[%c1_12, %c0_13, %c0_14], %16 {strides = array<i32>} : memref<2x192x256xf32, #tpu.memory_space<vmem>>, vector<1x192x256xf32>,
    %cst_15 = arith.constant dense<0.000000e+00> : vector<192xf32>
    %17 = vector.multi_reduction <add>, %13, %cst_15 [1] : vector<192x256xf32> to vector<192xf32>
    %18 = vector.shape_cast %17 : vector<192xf32> to vector<192x1xf32>
    %19 = arith.addf %10, %18 : vector<192x1xf32>
    %cst_16 = arith.constant 0.001953125 : f32
    %20 = vector.broadcast %cst_16 : f32 to vector<192x1xf32>
    %21 = arith.mulf %19, %20 : vector<192x1xf32>
    %cst_17 = arith.constant 0.000000e+00 : f32
    %22 = vector.broadcast %cst_17 : f32 to vector<192x1xf32>
    %c0_18 = arith.constant 0 : index
    %c0_19 = arith.constant 0 : index
    %c0_20 = arith.constant 0 : index
    %23 = vector.load %arg6[%c0_18, %c0_19, %c0_20] : memref<2x192x256xf32, #tpu.memory_space<vmem>>, vector<1x192x256xf32>
    %24 = vector.shape_cast %23 : vector<1x192x256xf32> to vector<192x256xf32>
    %25 = vector.broadcast %21 : vector<192x1xf32> to vector<192x256xf32>
    %26 = arith.subf %24, %25 : vector<192x256xf32>
    %27 = arith.mulf %26, %26 : vector<192x256xf32>
    %cst_21 = arith.constant dense<0.000000e+00> : vector<192xf32>
    %28 = vector.multi_reduction <add>, %27, %cst_21 [1] : vector<192x256xf32> to vector<192xf32>
    %29 = vector.shape_cast %28 : vector<192xf32> to vector<192x1xf32>
    %30 = arith.addf %22, %29 : vector<192x1xf32>
    %c1_22 = arith.constant 1 : index
    %c0_23 = arith.constant 0 : index
    %c0_24 = arith.constant 0 : index
    %31 = vector.load %arg6[%c1_22, %c0_23, %c0_24] : memref<2x192x256xf32, #tpu.memory_space<vmem>>, vector<1x192x256xf32>
    %32 = vector.shape_cast %31 : vector<1x192x256xf32> to vector<192x256xf32>
    %33 = vector.broadcast %21 : vector<192x1xf32> to vector<192x256xf32>
    %34 = arith.subf %32, %33 : vector<192x256xf32>
    %35 = arith.mulf %34, %34 : vector<192x256xf32>
    %cst_25 = arith.constant dense<0.000000e+00> : vector<192xf32>
    %36 = vector.multi_reduction <add>, %35, %cst_25 [1] : vector<192x256xf32> to vector<192xf32>
    %37 = vector.shape_cast %36 : vector<192xf32> to vector<192x1xf32>
    %38 = arith.addf %30, %37 : vector<192x1xf32>
    %cst_26 = arith.constant 0.001953125 : f32
    %39 = vector.broadcast %cst_26 : f32 to vector<192x1xf32>
    %40 = arith.mulf %38, %39 : vector<192x1xf32>
    %cst_27 = arith.constant 1.000000e-03 : f32
    %41 = vector.broadcast %cst_27 : f32 to vector<192x1xf32>
    %42 = arith.addf %40, %41 : vector<192x1xf32>
    %43 = math.rsqrt %42 : vector<192x1xf32>
    %c0_28 = arith.constant 0 : index
    %c0_29 = arith.constant 0 : index
    %44 = vector.load %arg3[%c0_28, %c0_29] : memref<192x1xf32, #tpu.memory_space<vmem>>, vector<192x1xf32>
    %45 = arith.mulf %44, %43 : vector<192x1xf32>
    %c0_30 = arith.constant 0 : index
    %c0_31 = arith.constant 0 : index
    %46 = vector.load %arg4[%c0_30, %c0_31] : memref<192x1xf32, #tpu.memory_space<vmem>>, vector<192x1xf32>
    %47 = arith.mulf %21, %45 : vector<192x1xf32>
    %48 = arith.subf %46, %47 : vector<192x1xf32>
    %c0_32 = arith.constant 0 : index
    %c0_33 = arith.constant 0 : index
    %c0_34 = arith.constant 0 : index
    %49 = vector.load %arg6[%c0_32, %c0_33, %c0_34] : memref<2x192x256xf32, #tpu.memory_space<vmem>>, vector<1x192x256xf32>
    %50 = vector.shape_cast %49 : vector<1x192x256xf32> to vector<192x256xf32>
    %51 = vector.broadcast %45 : vector<192x1xf32> to vector<192x256xf32>
    %52 = arith.mulf %50, %51 : vector<192x256xf32>
    %53 = vector.broadcast %48 : vector<192x1xf32> to vector<192x256xf32>
    %54 = arith.addf %52, %53 : vector<192x256xf32>
    %c0_35 = arith.constant 0 : index
    %c0_36 = arith.constant 0 : index
    %c0_37 = arith.constant 0 : index
    %55 = vector.load %arg5[%c0_35, %c0_36, %c0_37] : memref<2x192x256xf32, #tpu.memory_space<vmem>>, vector<1x192x256xf32>
    %56 = vector.shape_cast %55 : vector<1x192x256xf32> to vector<192x256xf32>
    %57 = vector.shape_cast %54 : vector<192x256xf32> to vector<1x192x256xf32>
    tpu.vector_store %arg5[%c0_35, %c0_36, %c0_37], %57 {strides = array<i32>} : memref<2x192x256xf32, #tpu.memory_space<vmem>>, vector<1x192x256xf32>,
    %c1_38 = arith.constant 1 : index
    %c0_39 = arith.constant 0 : index
    %c0_40 = arith.constant 0 : index
    %58 = vector.load %arg6[%c1_38, %c0_39, %c0_40] : memref<2x192x256xf32, #tpu.memory_space<vmem>>, vector<1x192x256xf32>
    %59 = vector.shape_cast %58 : vector<1x192x256xf32> to vector<192x256xf32>
    %60 = vector.broadcast %45 : vector<192x1xf32> to vector<192x256xf32>
    %61 = arith.mulf %59, %60 : vector<192x256xf32>
    %62 = vector.broadcast %48 : vector<192x1xf32> to vector<192x256xf32>
    %63 = arith.addf %61, %62 : vector<192x256xf32>
    %c1_41 = arith.constant 1 : index
    %c0_42 = arith.constant 0 : index
    %c0_43 = arith.constant 0 : index
    %64 = vector.load %arg5[%c1_41, %c0_42, %c0_43] : memref<2x192x256xf32, #tpu.memory_space<vmem>>, vector<1x192x256xf32>
    %65 = vector.shape_cast %64 : vector<1x192x256xf32> to vector<192x256xf32>
    %66 = vector.shape_cast %63 : vector<192x256xf32> to vector<1x192x256xf32>
    tpu.vector_store %arg5[%c1_41, %c0_42, %c0_43], %66 {strides = array<i32>} : memref<2x192x256xf32, #tpu.memory_space<vmem>>, vector<1x192x256xf32>,
    return
  }
  func.func @transform_0(%arg0: i32) -> (i32, i32, i32) {
    %c0_i32 = arith.constant 0 : i32
    %c0_i32_0 = arith.constant 0 : i32
    %c0_i32_1 = arith.constant 0 : i32
    %c0_i32_2 = arith.constant 0 : i32
    return %c0_i32, %c0_i32_0, %c0_i32_1 : i32, i32, i32
  }
  func.func @transform_1(%arg0: i32) -> (i32, i32) {
    %c0_i32 = arith.constant 0 : i32
    %c0_i32_0 = arith.constant 0 : i32
    %c0_i32_1 = arith.constant 0 : i32
    return %c0_i32, %c0_i32_0 : i32, i32
  }
  func.func @transform_2(%arg0: i32) -> (i32, i32) {
    %c0_i32 = arith.constant 0 : i32
    %c0_i32_0 = arith.constant 0 : i32
    %c0_i32_1 = arith.constant 0 : i32
    return %c0_i32, %c0_i32_0 : i32, i32
  }
  func.func @transform_3(%arg0: i32) -> (i32, i32) {
    %c0_i32 = arith.constant 0 : i32
    %c0_i32_0 = arith.constant 0 : i32
    %c0_i32_1 = arith.constant 0 : i32
    return %c0_i32, %c0_i32_0 : i32, i32
  }
  func.func @transform_4(%arg0: i32) -> (i32, i32, i32) {
    %c0_i32 = arith.constant 0 : i32
    %c0_i32_0 = arith.constant 0 : i32
    %c0_i32_1 = arith.constant 0 : i32
    %c0_i32_2 = arith.constant 0 : i32
    return %c0_i32, %c0_i32_0, %c0_i32_1 : i32, i32, i32
  }
}

</mosaic_0001>

<bundles_post_ra>
// kernel: tpu_custom_call.1
= control target key start
LH: loop header
LB: loop body
LE: loop exit
PB: predicated region body
PF: predicated region fallthrough
CT: control target
= control target key end

     0   :  { %vm50_vm0 = vcmask 261120   ;;  %s3868_s0 = inlined_call_operand.vmem [shape: f32[2,32,256], index: 0, kind: input, shape index: {}]   ;;  %s3869_s1 = inlined_call_operand.vmem [shape: f32[192,32], index: 1, kind: input, shape index: {}]   ;;  %s3870_s2 = inlined_call_operand.vmem [shape: f32[192,1], index: 2, kind: input, shape index: {}]   ;;  %s3871_s3 = inlined_call_operand.vmem [shape: f32[192,1], index: 3, kind: input, shape index: {}]   ;;  %s3872_s4 = inlined_call_operand.hbm [shape: f32[2,192,256], index: 4, kind: output, shape index: {}]  }
   0x1   :  { %v48_v0 = vld [vmem:[%s3868_s0 + $0x30] sm:$0xff]  ;;  %v49_v1 = vld [vmem:[%s3868_s0 + $0x38] sm:$0xff]  ;;  %v46_v4 = vld [vmem:[%s3868_s0 + $0x20] sm:$0xff] }
   0x2   :  { %v2338_v2 = vld [vmem:[%s3868_s0 + $0x70] sm:$0xff]  ;;  %135 = vmatpush.msra.mxu0 %v48_v0  ;;  %224 = vmatpush.msra.mxu1 %v49_v1  ;;  %v2339_v3 = vld [vmem:[%s3868_s0 + $0x78] sm:$0xff]  ;;  %v47_v5 = vld [vmem:[%s3868_s0 + $0x28] sm:$0xff] }
   0x3   :  { %466 = vmatpush.msra.mxu2 %v2338_v2  ;;  %555 = vmatpush.msra.mxu3 %v2339_v3  ;;  %v2336_v6 = vld [vmem:[%s3868_s0 + $0x60] sm:$0xff]  ;;  %v2337_v7 = vld [vmem:[%s3868_s0 + $0x68] sm:$0xff]  ;;  %v44_v8 = vld [vmem:[%s3868_s0 + $0x10] sm:$0xff] }
   0x4   :  { %136 = vmatpush.msra.mxu0 %v46_v4  ;;  %225 = vmatpush.msra.mxu1 %v47_v5  ;;  %v45_v9 = vld [vmem:[%s3868_s0 + $0x18] sm:$0xff]  ;;  %v2334_v10 = vld [vmem:[%s3868_s0 + $0x50] sm:$0xff]  ;;  %v42_v12 = vld [vmem:[%s3868_s0] sm:$0xff] }
   0x5   :  { %v2335_v11 = vld [vmem:[%s3868_s0 + $0x58] sm:$0xff]  ;;  %467 = vmatpush.msra.mxu2 %v2336_v6  ;;  %556 = vmatpush.msra.mxu3 %v2337_v7  ;;  %v43_v13 = vld [vmem:[%s3868_s0 + $0x8] sm:$0xff]  ;;  %v2332_v14 = vld [vmem:[%s3868_s0 + $0x40] sm:$0xff] }
   0x6   :  { %137 = vmatpush.msra.mxu0 %v44_v8  ;;  %226 = vmatpush.msra.mxu1 %v45_v9  ;;  %v2333_v15 = vld [vmem:[%s3868_s0 + $0x48] sm:$0xff]  ;;  %v18_v16 = vld [vmem:[%s3869_s1] sm:$0xff] }
   0x7   :  { %468 = vmatpush.msra.mxu2 %v2334_v10  ;;  %557 = vmatpush.msra.mxu3 %v2335_v11 }
   0x8   :  { %138 = vmatpush.msra.mxu0 %v42_v12  ;;  %227 = vmatpush.msra.mxu1 %v43_v13 }
   0x9   :  { %9 = vsyncpa [#allocation4], 0  ;;  %469 = vmatpush.msra.mxu2 %v2332_v14  ;;  %558 = vmatpush.msra.mxu3 %v2333_v15  ;;  %v19_v17 = vld [vmem:[%s3869_s1 + $0x8] sm:$0xff]  ;;  %v20_v18 = vld [vmem:[%s3869_s1 + $0x10] sm:$0xff]  ;;  %s2272_s27 = sshll.u32 %s3872_s4, 4  ;;  %s2471_s28 = smov 256   ;;  %s2273_s27 = int_to_ptr.hbm [resolvable:$true] %s2272_s27 }
   0xa   :  { %2284 = vmatmul.msk.f32.vlgmr.msra.gmra.mxu0 %vm50_vm0, %v18_v16  ;;  %2308 = vmatmul.msk.f32.vlgmr.msra.gmra.mxu1 %vm50_vm0, %v18_v16  ;;  %v21_v19 = vld [vmem:[%s3869_s1 + $0x18] sm:$0xff]  ;;  %v22_v20 = vld [vmem:[%s3869_s1 + $0x20] sm:$0xff]  ;;  %v23_v21 = vld [vmem:[%s3869_s1 + $0x28] sm:$0xff]  ;;  %s2472_s29 = smov 16  }
   0xb   :  { %2340 = vmatmul.msk.f32.vlgmr.msra.gmra.mxu2 %vm50_vm0, %v18_v16  ;;  %2364 = vmatmul.msk.f32.vlgmr.msra.gmra.mxu3 %vm50_vm0, %v18_v16  ;;  %v24_v22 = vld [vmem:[%s3869_s1 + $0x30] sm:$0xff]  ;;  %v25_v23 = vld [vmem:[%s3869_s1 + $0x38] sm:$0xff]  ;;  %v26_v24 = vld [vmem:[%s3869_s1 + $0x40] sm:$0xff] }
   0xc   :  { %v27_v25 = vld [vmem:[%s3869_s1 + $0x48] sm:$0xff]  ;;  %v28_v26 = vld [vmem:[%s3869_s1 + $0x50] sm:$0xff]  ;;  %v29_v27 = vld [vmem:[%s3869_s1 + $0x58] sm:$0xff] }
   0xd   :  { %v30_v28 = vld [vmem:[%s3869_s1 + $0x60] sm:$0xff]  ;;  %v31_v29 = vld [vmem:[%s3869_s1 + $0x68] sm:$0xff]  ;;  %v32_v30 = vld [vmem:[%s3869_s1 + $0x70] sm:$0xff] }
   0xe   :  { %v33_v31 = vld [vmem:[%s3869_s1 + $0x78] sm:$0xff]  ;;  %v34_v34 = vld [vmem:[%s3869_s1 + $0x80] sm:$0xff]  ;;  %v35_v40 = vld [vmem:[%s3869_s1 + $0x88] sm:$0xff] }
   0xf   :  { %v36_v47 = vld [vmem:[%s3869_s1 + $0x90] sm:$0xff]  ;;  %v37_v55 = vld [vmem:[%s3869_s1 + $0x98] sm:$0xff]  ;;  %v38_v62 = vld [vmem:[%s3869_s1 + $0xa0] sm:$0xff] }
  0x10   :  { %v39_v5 = vld [vmem:[%s3869_s1 + $0xa8] sm:$0xff]  ;;  %v40_v13 = vld [vmem:[%s3869_s1 + $0xb0] sm:$0xff] }
  0x12   :  { %2285 = vmatmul.msk.f32.gmra.mxu0 %vm50_vm0, %v19_v17  ;;  %2309 = vmatmul.msk.f32.gmra.mxu1 %vm50_vm0, %v19_v17 }
  0x13   :  { %2341 = vmatmul.msk.f32.gmra.mxu2 %vm50_vm0, %v19_v17  ;;  %2365 = vmatmul.msk.f32.gmra.mxu3 %vm50_vm0, %v19_v17 }
  0x1a   :  { %2286 = vmatmul.msk.f32.gmra.mxu0 %vm50_vm0, %v20_v18  ;;  %2310 = vmatmul.msk.f32.gmra.mxu1 %vm50_vm0, %v20_v18 }
  0x1b   :  { %2342 = vmatmul.msk.f32.gmra.mxu2 %vm50_vm0, %v20_v18  ;;  %2366 = vmatmul.msk.f32.gmra.mxu3 %vm50_vm0, %v20_v18 }
  0x22   :  { %2287 = vmatmul.msk.f32.gmra.mxu0 %vm50_vm0, %v21_v19  ;;  %2311 = vmatmul.msk.f32.gmra.mxu1 %vm50_vm0, %v21_v19 }
  0x23   :  { %2343 = vmatmul.msk.f32.gmra.mxu2 %vm50_vm0, %v21_v19  ;;  %2367 = vmatmul.msk.f32.gmra.mxu3 %vm50_vm0, %v21_v19 }
  0x2a   :  { %2288 = vmatmul.msk.f32.gmra.mxu0 %vm50_vm0, %v22_v20  ;;  %2312 = vmatmul.msk.f32.gmra.mxu1 %vm50_vm0, %v22_v20 }
  0x2b   :  { %2344 = vmatmul.msk.f32.gmra.mxu2 %vm50_vm0, %v22_v20  ;;  %2368 = vmatmul.msk.f32.gmra.mxu3 %vm50_vm0, %v22_v20  ;;  %v41_v20 = vld [vmem:[%s3869_s1 + $0xb8] sm:$0xff] }
  0x32   :  { %2289 = vmatmul.msk.f32.gmra.mxu0 %vm50_vm0, %v23_v21  ;;  %2313 = vmatmul.msk.f32.gmra.mxu1 %vm50_vm0, %v23_v21 }
  0x33   :  { %2345 = vmatmul.msk.f32.gmra.mxu2 %vm50_vm0, %v23_v21  ;;  %2369 = vmatmul.msk.f32.gmra.mxu3 %vm50_vm0, %v23_v21 }
  0x3a   :  { %2290 = vmatmul.msk.f32.gmra.mxu0 %vm50_vm0, %v24_v22  ;;  %2314 = vmatmul.msk.f32.gmra.mxu1 %vm50_vm0, %v24_v22 }
  0x3b   :  { %2346 = vmatmul.msk.f32.gmra.mxu2 %vm50_vm0, %v24_v22  ;;  %2370 = vmatmul.msk.f32.gmra.mxu3 %vm50_vm0, %v24_v22 }
  0x42   :  { %2291 = vmatmul.msk.f32.gmra.mxu0 %vm50_vm0, %v25_v23  ;;  %2315 = vmatmul.msk.f32.gmra.mxu1 %vm50_vm0, %v25_v23 }
  0x43   :  { %2347 = vmatmul.msk.f32.gmra.mxu2 %vm50_vm0, %v25_v23  ;;  %2371 = vmatmul.msk.f32.gmra.mxu3 %vm50_vm0, %v25_v23 }
  0x4a   :  { %2292 = vmatmul.msk.f32.gmra.mxu0 %vm50_vm0, %v26_v24  ;;  %2316 = vmatmul.msk.f32.gmra.mxu1 %vm50_vm0, %v26_v24 }
  0x4b   :  { %2348 = vmatmul.msk.f32.gmra.mxu2 %vm50_vm0, %v26_v24  ;;  %2372 = vmatmul.msk.f32.gmra.mxu3 %vm50_vm0, %v26_v24 }
  0x52   :  { %2293 = vmatmul.msk.f32.gmra.mxu0 %vm50_vm0, %v27_v25  ;;  %2317 = vmatmul.msk.f32.gmra.mxu1 %vm50_vm0, %v27_v25 }
  0x53   :  { %2349 = vmatmul.msk.f32.gmra.mxu2 %vm50_vm0, %v27_v25  ;;  %2373 = vmatmul.msk.f32.gmra.mxu3 %vm50_vm0, %v27_v25 }
  0x5a   :  { %2294 = vmatmul.msk.f32.gmra.mxu0 %vm50_vm0, %v28_v26  ;;  %2318 = vmatmul.msk.f32.gmra.mxu1 %vm50_vm0, %v28_v26 }
  0x5b   :  { %2350 = vmatmul.msk.f32.gmra.mxu2 %vm50_vm0, %v28_v26  ;;  %2374 = vmatmul.msk.f32.gmra.mxu3 %vm50_vm0, %v28_v26 }
  0x62   :  { %2295 = vmatmul.msk.f32.gmra.mxu0 %vm50_vm0, %v29_v27  ;;  %2319 = vmatmul.msk.f32.gmra.mxu1 %vm50_vm0, %v29_v27 }
  0x63   :  { %2351 = vmatmul.msk.f32.gmra.mxu2 %vm50_vm0, %v29_v27  ;;  %2375 = vmatmul.msk.f32.gmra.mxu3 %vm50_vm0, %v29_v27 }
  0x6a   :  { %2296 = vmatmul.msk.f32.gmra.mxu0 %vm50_vm0, %v30_v28  ;;  %2320 = vmatmul.msk.f32.gmra.mxu1 %vm50_vm0, %v30_v28 }
  0x6b   :  { %2352 = vmatmul.msk.f32.gmra.mxu2 %vm50_vm0, %v30_v28  ;;  %2376 = vmatmul.msk.f32.gmra.mxu3 %vm50_vm0, %v30_v28 }
  0x72   :  { %2297 = vmatmul.msk.f32.gmra.mxu0 %vm50_vm0, %v31_v29  ;;  %2321 = vmatmul.msk.f32.gmra.mxu1 %vm50_vm0, %v31_v29 }
  0x73   :  { %2353 = vmatmul.msk.f32.gmra.mxu2 %vm50_vm0, %v31_v29  ;;  %2377 = vmatmul.msk.f32.gmra.mxu3 %vm50_vm0, %v31_v29 }
  0x7a   :  { %2298 = vmatmul.msk.f32.gmra.mxu0 %vm50_vm0, %v32_v30  ;;  %2322 = vmatmul.msk.f32.gmra.mxu1 %vm50_vm0, %v32_v30 }
  0x7b   :  { %2354 = vmatmul.msk.f32.gmra.mxu2 %vm50_vm0, %v32_v30  ;;  %2378 = vmatmul.msk.f32.gmra.mxu3 %vm50_vm0, %v32_v30 }
  0x82   :  { %2299 = vmatmul.msk.f32.gmra.mxu0 %vm50_vm0, %v33_v31  ;;  %2323 = vmatmul.msk.f32.gmra.mxu1 %vm50_vm0, %v33_v31 }
  0x83   :  { %2355 = vmatmul.msk.f32.gmra.mxu2 %vm50_vm0, %v33_v31  ;;  %2379 = vmatmul.msk.f32.gmra.mxu3 %vm50_vm0, %v33_v31 }
  0x87   :  { %v2658_v32 = vpop.f32.mrf.mxu0  ;;  %v2660_v33 = vpop.f32.mrf.mxu1 }
  0x88   :  { %3996 = vst [vmem:[#allocation6_spill] sm:$0xff] %v2658_v32  ;;  %v349_v35 = vadd.f32 %v2660_v33, %v2658_v32 }
  0x89   :  { %3997 = vst [vmem:[#allocation7_spill] sm:$0xff] %v2660_v33 }
  0x8a   :  { %2300 = vmatmul.msk.f32.gmra.mxu0 %vm50_vm0, %v34_v34  ;;  %2324 = vmatmul.msk.f32.gmra.mxu1 %vm50_vm0, %v34_v34 }
  0x8b   :  { %350 = vadd.xlane.f32.xlu0 %v349_v35  ;;  %2356 = vmatmul.msk.f32.gmra.mxu2 %vm50_vm0, %v34_v34 }
  0x8c   :  { %2380 = vmatmul.msk.f32.gmra.mxu3 %vm50_vm0, %v34_v34 }
  0x8e   :  { %v2671_v36 = vpop.f32.mrf.mxu2  ;;  %v2673_v37 = vpop.f32.mrf.mxu3 }
  0x8f   :  { %3998 = vst [vmem:[#allocation8_spill] sm:$0xff] %v2671_v36  ;;  %v2675_v38 = vpop.f32.mrf.mxu0  ;;  %v2677_v39 = vpop.f32.mrf.mxu1  ;;  %v681_v41 = vadd.f32 %v2673_v37, %v2671_v36 }
  0x90   :  { %3999 = vst [vmem:[#allocation9_spill] sm:$0xff] %v2673_v37  ;;  %v352_v48 = vadd.f32 %v2677_v39, %v2675_v38 }
  0x91   :  { %4000 = vst [vmem:[#allocation10_spill] sm:$0xff] %v2675_v38 }
  0x92   :  { %4001 = vst [vmem:[#allocation11_spill] sm:$0xff] %v2677_v39  ;;  %2301 = vmatmul.msk.f32.gmra.mxu0 %vm50_vm0, %v35_v40  ;;  %2325 = vmatmul.msk.f32.gmra.mxu1 %vm50_vm0, %v35_v40 }
  0x93   :  { %682 = vadd.xlane.f32.xlu0 %v681_v41  ;;  %2357 = vmatmul.msk.f32.gmra.mxu2 %vm50_vm0, %v35_v40 }
  0x94   :  { %2381 = vmatmul.msk.f32.gmra.mxu3 %vm50_vm0, %v35_v40 }
  0x96   :  { %v2688_v42 = vpop.f32.mrf.mxu2  ;;  %v2690_v43 = vpop.f32.mrf.mxu3 }
  0x97   :  { %4002 = vst [vmem:[#allocation12_spill] sm:$0xff] %v2688_v42  ;;  %v2692_v44 = vpop.f32.mrf.mxu0  ;;  %v2694_v45 = vpop.f32.mrf.mxu1  ;;  %v684_v46 = vadd.f32 %v2690_v43, %v2688_v42 }
  0x98   :  { %4003 = vst [vmem:[#allocation13_spill] sm:$0xff] %v2690_v43  ;;  %v355_v54 = vadd.f32 %v2694_v45, %v2692_v44 }
  0x99   :  { %4004 = vst [vmem:[#allocation14_spill] sm:$0xff] %v2692_v44  ;;  %685 = vadd.xlane.f32.xlu1 %v684_v46 }
  0x9a   :  { %4005 = vst [vmem:[#allocation15_spill] sm:$0xff] %v2694_v45  ;;  %2302 = vmatmul.msk.f32.gmra.mxu0 %vm50_vm0, %v36_v47  ;;  %2326 = vmatmul.msk.f32.gmra.mxu1 %vm50_vm0, %v36_v47 }
  0x9b   :  { %353 = vadd.xlane.f32.xlu0 %v352_v48  ;;  %2358 = vmatmul.msk.f32.gmra.mxu2 %vm50_vm0, %v36_v47 }
  0x9c   :  { %2382 = vmatmul.msk.f32.gmra.mxu3 %vm50_vm0, %v36_v47 }
  0x9e   :  { %v2707_v49 = vpop.f32.mrf.mxu2  ;;  %v2709_v50 = vpop.f32.mrf.mxu3 }
  0x9f   :  { %4006 = vst [vmem:[#allocation16_spill] sm:$0xff] %v2707_v49  ;;  %v2711_v51 = vpop.f32.mrf.mxu0  ;;  %v2713_v52 = vpop.f32.mrf.mxu1  ;;  %v687_v53 = vadd.f32 %v2709_v50, %v2707_v49 }
  0xa0   :  { %4007 = vst [vmem:[#allocation17_spill] sm:$0xff] %v2709_v50  ;;  %v358_v61 = vadd.f32 %v2713_v52, %v2711_v51 }
  0xa1   :  { %4008 = vst [vmem:[#allocation18_spill] sm:$0xff] %v2711_v51  ;;  %688 = vadd.xlane.f32.xlu2 %v687_v53  ;;  %356 = vadd.xlane.f32.xlu1 %v355_v54 }
  0xa2   :  { %4009 = vst [vmem:[#allocation19_spill] sm:$0xff] %v2713_v52  ;;  %2303 = vmatmul.msk.f32.gmra.mxu0 %vm50_vm0, %v37_v55  ;;  %2327 = vmatmul.msk.f32.gmra.mxu1 %vm50_vm0, %v37_v55 }
  0xa3   :  { %2359 = vmatmul.msk.f32.gmra.mxu2 %vm50_vm0, %v37_v55 }
  0xa4   :  { %2383 = vmatmul.msk.f32.gmra.mxu3 %vm50_vm0, %v37_v55 }
  0xa6   :  { %v2726_v56 = vpop.f32.mrf.mxu2  ;;  %v2728_v57 = vpop.f32.mrf.mxu3 }
  0xa7   :  { %4010 = vst [vmem:[#allocation20_spill] sm:$0xff] %v2726_v56  ;;  %v2730_v58 = vpop.f32.mrf.mxu0  ;;  %v2732_v59 = vpop.f32.mrf.mxu1  ;;  %v690_v60 = vadd.f32 %v2728_v57, %v2726_v56 }
  0xa8   :  { %4011 = vst [vmem:[#allocation21_spill] sm:$0xff] %v2728_v57  ;;  %v361_v63 = vadd.f32 %v2732_v59, %v2730_v58 }
  0xa9   :  { %4012 = vst [vmem:[#allocation22_spill] sm:$0xff] %v2730_v58  ;;  %691 = vadd.xlane.f32.xlu0 %v690_v60  ;;  %359 = vadd.xlane.f32.xlu1 %v358_v61 }
  0xaa   :  { %4013 = vst [vmem:[#allocation23_spill] sm:$0xff] %v2732_v59  ;;  %362 = vadd.xlane.f32.xlu2 %v361_v63  ;;  %2304 = vmatmul.msk.f32.gmra.mxu0 %vm50_vm0, %v38_v62 }
  0xab   :  { %2328 = vmatmul.msk.f32.gmra.mxu1 %vm50_vm0, %v38_v62  ;;  %2360 = vmatmul.msk.f32.gmra.mxu2 %vm50_vm0, %v38_v62 }
  0xac   :  { %2384 = vmatmul.msk.f32.gmra.mxu3 %vm50_vm0, %v38_v62 }
  0xae   :  { %v2747_v0 = vpop.f32.mrf.mxu2  ;;  %v2749_v1 = vpop.f32.mrf.mxu3 }
  0xaf   :  { %4014 = vst [vmem:[#allocation24_spill] sm:$0xff] %v2747_v0  ;;  %v2751_v2 = vpop.f32.mrf.mxu0  ;;  %v2753_v3 = vpop.f32.mrf.mxu1  ;;  %v693_v4 = vadd.f32 %v2749_v1, %v2747_v0 }
  0xb0   :  { %4015 = vst [vmem:[#allocation25_spill] sm:$0xff] %v2749_v1  ;;  %v364_v6 = vadd.f32 %v2753_v3, %v2751_v2 }
  0xb1   :  { %4016 = vst [vmem:[#allocation26_spill] sm:$0xff] %v2751_v2  ;;  %694 = vadd.xlane.f32.xlu1 %v693_v4 }
  0xb2   :  { %4017 = vst [vmem:[#allocation27_spill] sm:$0xff] %v2753_v3  ;;  %365 = vadd.xlane.f32.xlu2 %v364_v6  ;;  %2305 = vmatmul.msk.f32.gmra.mxu0 %vm50_vm0, %v39_v5 }
  0xb3   :  { %2329 = vmatmul.msk.f32.gmra.mxu1 %vm50_vm0, %v39_v5  ;;  %2361 = vmatmul.msk.f32.gmra.mxu2 %vm50_vm0, %v39_v5 }
  0xb4   :  { %2385 = vmatmul.msk.f32.gmra.mxu3 %vm50_vm0, %v39_v5 }
  0xb6   :  { %v2766_v7 = vpop.f32.mrf.mxu2  ;;  %v2768_v8 = vpop.f32.mrf.mxu3 }
  0xb7   :  { %4018 = vst [vmem:[#allocation28_spill] sm:$0xff] %v2766_v7  ;;  %v2770_v9 = vpop.f32.mrf.mxu0  ;;  %v2772_v10 = vpop.f32.mrf.mxu1  ;;  %v696_v11 = vadd.f32 %v2768_v8, %v2766_v7 }
  0xb8   :  { %4019 = vst [vmem:[#allocation29_spill] sm:$0xff] %v2768_v8  ;;  %v367_v12 = vadd.f32 %v2772_v10, %v2770_v9 }
  0xb9   :  { %4020 = vst [vmem:[#allocation30_spill] sm:$0xff] %v2770_v9 }
  0xba   :  { %4021 = vst [vmem:[#allocation31_spill] sm:$0xff] %v2772_v10  ;;  %697 = vadd.xlane.f32.xlu2 %v696_v11  ;;  %368 = vadd.xlane.f32.xlu0 %v367_v12 }
  0xbb   :  { %2306 = vmatmul.msk.f32.gmra.mxu0 %vm50_vm0, %v40_v13  ;;  %2330 = vmatmul.msk.f32.gmra.mxu1 %vm50_vm0, %v40_v13 }
  0xbc   :  { %2362 = vmatmul.msk.f32.gmra.mxu2 %vm50_vm0, %v40_v13  ;;  %2386 = vmatmul.msk.f32.gmra.mxu3 %vm50_vm0, %v40_v13 }
  0xbe   :  { %v2785_v14 = vpop.f32.mrf.mxu2  ;;  %v2787_v15 = vpop.f32.mrf.mxu3 }
  0xbf   :  { %4022 = vst [vmem:[#allocation32_spill] sm:$0xff] %v2785_v14  ;;  %v2789_v16 = vpop.f32.mrf.mxu0  ;;  %v2791_v17 = vpop.f32.mrf.mxu1  ;;  %v699_v18 = vadd.f32 %v2787_v15, %v2785_v14 }
  0xc0   :  { %4023 = vst [vmem:[#allocation33_spill] sm:$0xff] %v2787_v15  ;;  %v370_v19 = vadd.f32 %v2791_v17, %v2789_v16 }
  0xc1   :  { %4024 = vst [vmem:[#allocation34_spill] sm:$0xff] %v2789_v16 }
  0xc2   :  { %700 = vadd.xlane.f32.xlu0 %v699_v18  ;;  %371 = vadd.xlane.f32.xlu1 %v370_v19 }
  0xc3   :  { %2307 = vmatmul.msk.f32.gmra.mxu0 %vm50_vm0, %v41_v20  ;;  %2331 = vmatmul.msk.f32.gmra.mxu1 %vm50_vm0, %v41_v20 }
  0xc4   :  { %2363 = vmatmul.msk.f32.gmra.mxu2 %vm50_vm0, %v41_v20  ;;  %2387 = vmatmul.msk.f32.gmra.mxu3 %vm50_vm0, %v41_v20 }
  0xc6   :  { %v2804_v21 = vpop.f32.mrf.mxu2  ;;  %v2806_v22 = vpop.f32.mrf.mxu3 }
  0xc7   :  { %v2808_v23 = vpop.f32.mrf.mxu0  ;;  %v2810_v24 = vpop.f32.mrf.mxu1  ;;  %v702_v25 = vadd.f32 %v2806_v22, %v2804_v21 }
  0xc8   :  { %4025 = vst [vmem:[#allocation35_spill] sm:$0xff] %v2808_v23  ;;  %v373_v26 = vadd.f32 %v2810_v24, %v2808_v23 }
  0xc9   :  { %4026 = vst [vmem:[#allocation36_spill] sm:$0xff] %v2810_v24 }
  0xca   :  { %703 = vadd.xlane.f32.xlu1 %v702_v25  ;;  %374 = vadd.xlane.f32.xlu2 %v373_v26 }
  0xce   :  { %v2816_v27 = vpop.f32.mrf.mxu2  ;;  %v2818_v28 = vpop.f32.mrf.mxu3 }
  0xcf   :  { %4027 = vst [vmem:[#allocation37_spill] sm:$0xff] %v2816_v27  ;;  %v2820_v29 = vpop.f32.mrf.mxu0  ;;  %v2822_v30 = vpop.f32.mrf.mxu1  ;;  %v705_v31 = vadd.f32 %v2818_v28, %v2816_v27 }
  0xd0   :  { %4028 = vst [vmem:[#allocation38_spill] sm:$0xff] %v2818_v28  ;;  %v376_v34 = vadd.f32 %v2822_v30, %v2820_v29 }
  0xd1   :  { %4029 = vst [vmem:[#allocation39_spill] sm:$0xff] %v2820_v29 }
  0xd2   :  { %4030 = vst [vmem:[#allocation40_spill] sm:$0xff] %v2822_v30  ;;  %706 = vadd.xlane.f32.xlu2 %v705_v31  ;;  %377 = vadd.xlane.f32.xlu0 %v376_v34 }
  0xd6   :  { %v2828_v35 = vpop.f32.mrf.mxu2  ;;  %v2830_v40 = vpop.f32.mrf.mxu3 }
  0xd7   :  { %4031 = vst [vmem:[#allocation41_spill] sm:$0xff] %v2828_v35  ;;  %v2832_v41 = vpop.f32.mrf.mxu0  ;;  %v2834_v46 = vpop.f32.mrf.mxu1  ;;  %v708_v47 = vadd.f32 %v2830_v40, %v2828_v35 }
  0xd8   :  { %4032 = vst [vmem:[#allocation42_spill] sm:$0xff] %v2830_v40  ;;  %v379_v48 = vadd.f32 %v2834_v46, %v2832_v41 }
  0xd9   :  { %4033 = vst [vmem:[#allocation43_spill] sm:$0xff] %v2832_v41 }
  0xda   :  { %4034 = vst [vmem:[#allocation44_spill] sm:$0xff] %v2834_v46  ;;  %709 = vadd.xlane.f32.xlu0 %v708_v47  ;;  %380 = vadd.xlane.f32.xlu1 %v379_v48 }
  0xde   :  { %v2840_v53 = vpop.f32.mrf.mxu2  ;;  %v2842_v54 = vpop.f32.mrf.mxu3 }
  0xdf   :  { %v2844_v55 = vpop.f32.mrf.mxu0  ;;  %v2846_v60 = vpop.f32.mrf.mxu1  ;;  %v711_v61 = vadd.f32 %v2842_v54, %v2840_v53 }
  0xe0   :  { %4035 = vst [vmem:[#allocation45_spill] sm:$0xff] %v2844_v55  ;;  %v382_v62 = vadd.f32 %v2846_v60, %v2844_v55 }
  0xe1   :  { %4036 = vst [vmem:[#allocation46_spill] sm:$0xff] %v2846_v60 }
  0xe2   :  { %712 = vadd.xlane.f32.xlu1 %v711_v61  ;;  %383 = vadd.xlane.f32.xlu2 %v382_v62 }
  0xe6   :  { %v2852_v63 = vpop.f32.mrf.mxu2  ;;  %v2854_v4 = vpop.f32.mrf.mxu3 }
  0xe7   :  { %4037 = vst [vmem:[#allocation47_spill] sm:$0xff] %v2852_v63  ;;  %v2856_v5 = vpop.f32.mrf.mxu0  ;;  %v2858_v6 = vpop.f32.mrf.mxu1  ;;  %v714_v11 = vadd.f32 %v2854_v4, %v2852_v63 }
  0xe8   :  { %4038 = vst [vmem:[#allocation48_spill] sm:$0xff] %v2854_v4  ;;  %v385_v12 = vadd.f32 %v2858_v6, %v2856_v5 }
  0xe9   :  { %4039 = vst [vmem:[#allocation49_spill] sm:$0xff] %v2856_v5 }
  0xea   :  { %4040 = vst [vmem:[#allocation50_spill] sm:$0xff] %v2858_v6  ;;  %715 = vadd.xlane.f32.xlu2 %v714_v11  ;;  %386 = vadd.xlane.f32.xlu0 %v385_v12 }
  0xee   :  { %v2864_v13 = vpop.f32.mrf.mxu2  ;;  %v2866_v18 = vpop.f32.mrf.mxu3 }
  0xef   :  { %4041 = vst [vmem:[#allocation51_spill] sm:$0xff] %v2864_v13  ;;  %v2868_v19 = vpop.f32.mrf.mxu0  ;;  %v2870_v20 = vpop.f32.mrf.mxu1  ;;  %v717_v25 = vadd.f32 %v2866_v18, %v2864_v13 }
  0xf0   :  { %4042 = vst [vmem:[#allocation52_spill] sm:$0xff] %v2866_v18  ;;  %v388_v26 = vadd.f32 %v2870_v20, %v2868_v19 }
  0xf1   :  { %4043 = vst [vmem:[#allocation53_spill] sm:$0xff] %v2868_v19 }
  0xf2   :  { %4044 = vst [vmem:[#allocation54_spill] sm:$0xff] %v2870_v20  ;;  %718 = vadd.xlane.f32.xlu0 %v717_v25  ;;  %389 = vadd.xlane.f32.xlu1 %v388_v26 }
  0xf6   :  { %v2876_v31 = vpop.f32.mrf.mxu2  ;;  %v2878_v34 = vpop.f32.mrf.mxu3 }
  0xf7   :  { %4045 = vst [vmem:[#allocation55_spill] sm:$0xff] %v2876_v31  ;;  %v2880_v47 = vpop.f32.mrf.mxu0  ;;  %v2882_v48 = vpop.f32.mrf.mxu1  ;;  %v720_v61 = vadd.f32 %v2878_v34, %v2876_v31 }
  0xf8   :  { %4046 = vst [vmem:[#allocation56_spill] sm:$0xff] %v2878_v34  ;;  %v391_v62 = vadd.f32 %v2882_v48, %v2880_v47 }
  0xf9   :  { %4047 = vst [vmem:[#allocation57_spill] sm:$0xff] %v2880_v47 }
  0xfa   :  { %4048 = vst [vmem:[#allocation58_spill] sm:$0xff] %v2882_v48  ;;  %721 = vadd.xlane.f32.xlu1 %v720_v61  ;;  %392 = vadd.xlane.f32.xlu2 %v391_v62 }
  0xfe   :  { %v351_v11 = vpop.xlane.xlu0 %350  ;;  %v2888_v12 = vpop.f32.mrf.mxu2 }
  0xff   :  { %4049 = vst [vmem:[#allocation59_spill] sm:$0xff] %v2888_v12  ;;  %v2890_v25 = vpop.f32.mrf.mxu0  ;;  %v2892_v26 = vpop.f32.mrf.mxu1 }
 0x100   :  { %4050 = vst [vmem:[#allocation60_spill] sm:$0xff] %v2890_v25  ;;  %v2894_v4 = vpop.f32.mrf.mxu3  ;;  %v394_v20 = vadd.f32 %v2892_v26, %v2890_v25 }
 0x101   :  { %4051 = vst [vmem:[#allocation61_spill] sm:$0xff] %v2892_v26  ;;  %v723_v34 = vadd.f32 %v2894_v4, %v2888_v12 }
 0x102   :  { %4052 = vst [vmem:[#allocation62_spill] sm:$0xff] %v2894_v4  ;;  %395 = vadd.xlane.f32.xlu0 %v394_v20 }
 0x103   :  { %724 = vadd.xlane.f32.xlu2 %v723_v34 }
 0x106   :  { %v683_v48 = vpop.xlane.xlu0 %682  ;;  %v2900_v61 = vpop.f32.mrf.mxu2 }
 0x107   :  { %4053 = vst [vmem:[#allocation63_spill] sm:$0xff] %v2900_v61  ;;  %v753_v62 = vadd.f32 %v683_v48, %v351_v11  ;;  %v2902_v47 = vpop.f32.mrf.mxu0  ;;  %v2904_v31 = vpop.f32.mrf.mxu1 }
 0x108   :  { %4054 = vst [vmem:[#allocation64_spill] sm:$0xff] %v2902_v47  ;;  %v2906_v19 = vpop.f32.mrf.mxu3  ;;  %v397_v63 = vadd.f32 %v2904_v31, %v2902_v47 }
 0x109   :  { %4055 = vst [vmem:[#allocation65_spill] sm:$0xff] %v2904_v31  ;;  %v2910_v18 = vmul.f32 0.001953125, %v753_v62  ;;  %v726_v26 = vadd.f32 %v2906_v19, %v2900_v61 }
 0x10a   :  { %4056 = vst [vmem:[#allocation66_spill] sm:$0xff] %v2906_v19  ;;  %398 = vadd.xlane.f32.xlu1 %v397_v63 }
 0x10b   :  { %4057 = vst [vmem:[#allocation67_spill] sm:$0xff] %v2910_v18  ;;  %727 = vadd.xlane.f32.xlu0 %v726_v26  ;;  %v849_v20 = vsub.f32 %v2658_v32, %v2910_v18  ;;  %v850_v34 = vsub.f32 %v2660_v33, %v2910_v18  ;;  %v1089_v26 = vsub.f32 %v2671_v36, %v2910_v18 }
 0x10c   :  { %v686_v48 = vpop.xlane.xlu1 %685 }
 0x10d   :  { %v897_v11 = vmul.f32 %v849_v20, %v849_v20  ;;  %v898_v25 = vmul.f32 %v850_v34, %v850_v34  ;;  %v1090_v20 = vsub.f32 %v2673_v37, %v2910_v18 }
 0x10e   :  { %v354_v4 = vpop.xlane.xlu0 %353  ;;  %v2918_v12 = vpop.f32.mrf.mxu2 }
 0x10f   :  { %4058 = vst [vmem:[#allocation68_spill] sm:$0xff] %v2918_v12  ;;  %v754_v31 = vadd.f32 %v686_v48, %v354_v4  ;;  %v2920_v62 = vpop.f32.mrf.mxu0  ;;  %v2922_v47 = vpop.f32.mrf.mxu1  ;;  %v945_v33 = vadd.f32 %v898_v25, %v897_v11  ;;  %v1138_v61 = vmul.f32 %v1090_v20, %v1090_v20 }
 0x110   :  { %4059 = vst [vmem:[#allocation69_spill] sm:$0xff] %v2920_v62  ;;  %v2924_v19 = vpop.f32.mrf.mxu3  ;;  %v400_v63 = vadd.f32 %v2922_v47, %v2920_v62  ;;  %v1137_v62 = vmul.f32 %v1089_v26, %v1089_v26 }
 0x111   :  { %4060 = vst [vmem:[#allocation70_spill] sm:$0xff] %v2922_v47  ;;  %v2932_v34 = vmul.f32 0.001953125, %v754_v31  ;;  %v729_v4 = vadd.f32 %v2924_v19, %v2918_v12 }
 0x112   :  { %4061 = vst [vmem:[#allocation71_spill] sm:$0xff] %v2924_v19  ;;  %401 = vadd.xlane.f32.xlu2 %v400_v63 }
 0x113   :  { %4062 = vst [vmem:[#allocation72_spill] sm:$0xff] %v2932_v34  ;;  %946 = vadd.xlane.f32.xlu0 %v945_v33  ;;  %730 = vadd.xlane.f32.xlu1 %v729_v4  ;;  %v851_v48 = vsub.f32 %v2675_v38, %v2932_v34  ;;  %v852_v32 = vsub.f32 %v2677_v39, %v2932_v34 }
 0x114   :  { %v689_v47 = vpop.xlane.xlu2 %688  ;;  %v357_v36 = vpop.xlane.xlu1 %356  ;;  %v1185_v33 = vadd.f32 %v1138_v61, %v1137_v62 }
 0x115   :  { %v755_v37 = vadd.f32 %v689_v47, %v357_v36  ;;  %v899_v31 = vmul.f32 %v851_v48, %v851_v48  ;;  %v900_v18 = vmul.f32 %v852_v32, %v852_v32  ;;  %v1091_v36 = vsub.f32 %v2688_v42, %v2932_v34 }
 0x116   :  { %v2940_v25 = vpop.f32.mrf.mxu2  ;;  %v1092_v32 = vsub.f32 %v2690_v43, %v2932_v34 }
 0x117   :  { %4063 = vst [vmem:[#allocation73_spill] sm:$0xff] %v2940_v25  ;;  %v2942_v11 = vmul.f32 0.001953125, %v755_v37  ;;  %v948_v4 = vadd.f32 %v900_v18, %v899_v31  ;;  %v2948_v19 = vpop.f32.mrf.mxu0  ;;  %v2950_v39 = vpop.f32.mrf.mxu1  ;;  %v1139_v62 = vmul.f32 %v1091_v36, %v1091_v36 }
 0x118   :  { %v2944_v63 = vpop.f32.mrf.mxu3  ;;  %4066 = vst [vmem:[#allocation76_spill] sm:$0xff] %v2948_v19  ;;  %v1140_v26 = vmul.f32 %v1092_v32, %v1092_v32  ;;  %v403_v42 = vadd.f32 %v2950_v39, %v2948_v19 }
 0x119   :  { %4064 = vst [vmem:[#allocation74_spill] sm:$0xff] %v2942_v11  ;;  %v732_v38 = vadd.f32 %v2944_v63, %v2940_v25  ;;  %v853_v37 = vsub.f32 %v2692_v44, %v2942_v11  ;;  %v854_v47 = vsub.f32 %v2694_v45, %v2942_v11 }
 0x11a   :  { %4065 = vst [vmem:[#allocation75_spill] sm:$0xff] %v2944_v63  ;;  %v1188_v34 = vadd.f32 %v1140_v26, %v1139_v62 }
 0x11b   :  { %4067 = vst [vmem:[#allocation77_spill] sm:$0xff] %v2950_v39  ;;  %1186 = vadd.xlane.f32.xlu0 %v1185_v33  ;;  %949 = vadd.xlane.f32.xlu1 %v948_v4  ;;  %v901_v48 = vmul.f32 %v853_v37, %v853_v37  ;;  %v902_v31 = vmul.f32 %v854_v47, %v854_v47 }
 0x11c   :  { %733 = vadd.xlane.f32.xlu2 %v732_v38  ;;  %v360_v18 = vpop.xlane.xlu1 %359  ;;  %v692_v20 = vpop.xlane.xlu0 %691  ;;  %v1093_v38 = vsub.f32 %v2707_v49, %v2942_v11  ;;  %v1094_v33 = vsub.f32 %v2709_v50, %v2942_v11 }
 0x11d   :  { %v363_v61 = vpop.xlane.xlu2 %362  ;;  %v756_v43 = vadd.f32 %v692_v20, %v360_v18  ;;  %v951_v45 = vadd.f32 %v902_v31, %v901_v48 }
 0x11e   :  { %v2962_v63 = vpop.f32.mrf.mxu2  ;;  %v1141_v18 = vmul.f32 %v1093_v38, %v1093_v38  ;;  %v1142_v62 = vmul.f32 %v1094_v33, %v1094_v33 }
 0x11f   :  { %4068 = vst [vmem:[#allocation78_spill] sm:$0xff] %v2962_v63  ;;  %v2970_v4 = vpop.f32.mrf.mxu0  ;;  %v2972_v36 = vpop.f32.mrf.mxu1  ;;  %v2974_v32 = vmul.f32 0.001953125, %v756_v43 }
 0x120   :  { %v2964_v44 = vpop.f32.mrf.mxu3  ;;  %4070 = vst [vmem:[#allocation80_spill] sm:$0xff] %v2970_v4  ;;  %v406_v20 = vadd.f32 %v2972_v36, %v2970_v4 }
 0x121   :  { %4069 = vst [vmem:[#allocation79_spill] sm:$0xff] %v2964_v44  ;;  %v735_v26 = vadd.f32 %v2964_v44, %v2962_v63 }
 0x122   :  { %4071 = vst [vmem:[#allocation81_spill] sm:$0xff] %v2972_v36 }
 0x123   :  { %1189 = vadd.xlane.f32.xlu1 %v1188_v34  ;;  %404 = vadd.xlane.f32.xlu0 %v403_v42  ;;  %4072 = vst [vmem:[#allocation82_spill] sm:$0xff] %v2974_v32  ;;  %v855_v42 = vsub.f32 %v2711_v51, %v2974_v32  ;;  %v856_v34 = vsub.f32 %v2713_v52, %v2974_v32 }
 0x124   :  { %952 = vadd.xlane.f32.xlu2 %v951_v45  ;;  %v695_v47 = vpop.xlane.xlu1 %694  ;;  %v1191_v45 = vadd.f32 %v1142_v62, %v1141_v18  ;;  %v1095_v62 = vsub.f32 %v2726_v56, %v2974_v32 }
 0x125   :  { %v366_v37 = vpop.xlane.xlu2 %365  ;;  %v757_v48 = vadd.f32 %v695_v47, %v363_v61  ;;  %v903_v61 = vmul.f32 %v855_v42, %v855_v42  ;;  %v904_v47 = vmul.f32 %v856_v34, %v856_v34 }
 0x126   :  { %v2984_v43 = vpop.f32.mrf.mxu2  ;;  %v1143_v56 = vmul.f32 %v1095_v62, %v1095_v62 }
 0x127   :  { %4073 = vst [vmem:[#allocation83_spill] sm:$0xff] %v2984_v43  ;;  %v2988_v38 = vmul.f32 0.001953125, %v757_v48  ;;  %v2990_v33 = vpop.f32.mrf.mxu0 }
 0x128   :  { %v2986_v31 = vpop.f32.mrf.mxu3  ;;  %4076 = vst [vmem:[#allocation86_spill] sm:$0xff] %v2990_v33  ;;  %v2992_v50 = vpop.f32.mrf.mxu1 }
 0x129   :  { %4074 = vst [vmem:[#allocation84_spill] sm:$0xff] %v2986_v31  ;;  %v738_v52 = vadd.f32 %v2986_v31, %v2984_v43  ;;  %v409_v18 = vadd.f32 %v2992_v50, %v2990_v33  ;;  %v857_v48 = vsub.f32 %v2730_v58, %v2988_v38  ;;  %v858_v42 = vsub.f32 %v2732_v59, %v2988_v38 }
 0x12a   :  { %4075 = vst [vmem:[#allocation85_spill] sm:$0xff] %v2988_v38  ;;  %v1098_v62 = vsub.f32 %v2749_v1, %v2988_v38 }
 0x12b   :  { %736 = vadd.xlane.f32.xlu0 %v735_v26  ;;  %407 = vadd.xlane.f32.xlu1 %v406_v20  ;;  %4077 = vst [vmem:[#allocation87_spill] sm:$0xff] %v2992_v50  ;;  %v954_v26 = vadd.f32 %v904_v47, %v903_v61  ;;  %v1096_v20 = vsub.f32 %v2728_v57, %v2974_v32 }
 0x12c   :  { %1192 = vadd.xlane.f32.xlu2 %v1191_v45  ;;  %v905_v47 = vmul.f32 %v857_v48, %v857_v48  ;;  %v906_v31 = vmul.f32 %v858_v42, %v858_v42 }
 0x12d   :  { %v698_v51 = vpop.xlane.xlu2 %697  ;;  %v369_v45 = vpop.xlane.xlu0 %368  ;;  %v1144_v61 = vmul.f32 %v1096_v20, %v1096_v20 }
 0x12e   :  { %v758_v34 = vadd.f32 %v698_v51, %v366_v37  ;;  %v3006_v49 = vpop.f32.mrf.mxu2 }
 0x12f   :  { %4078 = vst [vmem:[#allocation88_spill] sm:$0xff] %v3006_v49  ;;  %v3014_v32 = vpop.f32.mrf.mxu0  ;;  %v1194_v37 = vadd.f32 %v1144_v61, %v1143_v56  ;;  %v1146_v56 = vmul.f32 %v1098_v62, %v1098_v62 }
 0x130   :  { %v3008_v11 = vpop.f32.mrf.mxu3  ;;  %v3010_v57 = vmul.f32 0.001953125, %v758_v34  ;;  %4081 = vst [vmem:[#allocation91_spill] sm:$0xff] %v3014_v32  ;;  %v3016_v51 = vpop.f32.mrf.mxu1 }
 0x131   :  { %4079 = vst [vmem:[#allocation89_spill] sm:$0xff] %v3008_v11  ;;  %v741_v58 = vadd.f32 %v3008_v11, %v3006_v49 }
 0x132   :  { %4080 = vst [vmem:[#allocation90_spill] sm:$0xff] %v3010_v57  ;;  %v860_v20 = vsub.f32 %v2753_v3, %v3010_v57 }
 0x133   :  { %955 = vadd.xlane.f32.xlu0 %v954_v26  ;;  %739 = vadd.xlane.f32.xlu1 %v738_v52  ;;  %4082 = vst [vmem:[#allocation92_spill] sm:$0xff] %v3016_v51  ;;  %v957_v52 = vadd.f32 %v906_v31, %v905_v47  ;;  %v859_v26 = vsub.f32 %v2751_v2, %v3010_v57 }
 0x134   :  { %410 = vadd.xlane.f32.xlu2 %v409_v18  ;;  %v1097_v18 = vsub.f32 %v2747_v0, %v2988_v38  ;;  %v908_v61 = vmul.f32 %v860_v20, %v860_v20  ;;  %v412_v47 = vadd.f32 %v3016_v51, %v3014_v32 }
 0x135   :  { %v372_v48 = vpop.xlane.xlu1 %371  ;;  %v701_v42 = vpop.xlane.xlu0 %700  ;;  %v907_v31 = vmul.f32 %v859_v26, %v859_v26 }
 0x136   :  { %v1145_v34 = vmul.f32 %v1097_v18, %v1097_v18  ;;  %v3028_v0 = vpop.f32.mrf.mxu2  ;;  %v759_v1 = vadd.f32 %v701_v42, %v369_v45 }
 0x137   :  { %4083 = vst [vmem:[#allocation93_spill] sm:$0xff] %v3028_v0  ;;  %v960_v38 = vadd.f32 %v908_v61, %v907_v31 }
 0x138   :  { %v1197_v59 = vadd.f32 %v1146_v56, %v1145_v34  ;;  %v3030_v2 = vpop.f32.mrf.mxu3  ;;  %v3032_v3 = vpop.f32.mrf.mxu0  ;;  %v3040_v62 = vmul.f32 0.001953125, %v759_v1 }
 0x139   :  { %4084 = vst [vmem:[#allocation94_spill] sm:$0xff] %v3030_v2  ;;  %v744_v34 = vadd.f32 %v3030_v2, %v3028_v0 }
 0x13a   :  { %4085 = vst [vmem:[#allocation95_spill] sm:$0xff] %v3032_v3  ;;  %v861_v61 = vsub.f32 %v2770_v9, %v3040_v62 }
 0x13b   :  { %1195 = vadd.xlane.f32.xlu0 %v1194_v37  ;;  %958 = vadd.xlane.f32.xlu1 %v957_v52  ;;  %v3034_v37 = vpop.f32.mrf.mxu1  ;;  %v1100_v52 = vsub.f32 %v2768_v8, %v3010_v57 }
 0x13c   :  { %742 = vadd.xlane.f32.xlu2 %v741_v58  ;;  %4086 = vst [vmem:[#allocation96_spill] sm:$0xff] %v3034_v37  ;;  %v1099_v58 = vsub.f32 %v2766_v7, %v3010_v57  ;;  %v415_v56 = vadd.f32 %v3034_v37, %v3032_v3  ;;  %v909_v9 = vmul.f32 %v861_v61, %v861_v61 }
 0x13d   :  { %v375_v18 = vpop.xlane.xlu2 %374  ;;  %v704_v45 = vpop.xlane.xlu1 %703  ;;  %v1148_v42 = vmul.f32 %v1100_v52, %v1100_v52 }
 0x13e   :  { %v1147_v20 = vmul.f32 %v1099_v58, %v1099_v58  ;;  %v760_v31 = vadd.f32 %v704_v45, %v372_v48 }
 0x13f   :  { %v3050_v1 = vpop.f32.mrf.mxu2 }
 0x140   :  { %4087 = vst [vmem:[#allocation97_spill] sm:$0xff] %v3050_v1  ;;  %v3054_v58 = vpop.f32.mrf.mxu0  ;;  %v3058_v8 = vmul.f32 0.001953125, %v760_v31 }
 0x141   :  { %4089 = vst [vmem:[#allocation99_spill] sm:$0xff] %v3054_v58 }
 0x142   :  { %v864_v61 = vsub.f32 %v2791_v17, %v3058_v8 }
 0x143   :  { %1198 = vadd.xlane.f32.xlu1 %v1197_v59  ;;  %413 = vadd.xlane.f32.xlu0 %v412_v47  ;;  %v862_v59 = vsub.f32 %v2772_v10, %v3040_v62  ;;  %v3052_v47 = vpop.f32.mrf.mxu3  ;;  %v3056_v52 = vpop.f32.mrf.mxu1  ;;  %v863_v10 = vsub.f32 %v2789_v16, %v3058_v8 }
 0x144   :  { %961 = vadd.xlane.f32.xlu2 %v960_v38  ;;  %v1200_v38 = vadd.f32 %v1148_v42, %v1147_v20  ;;  %4088 = vst [vmem:[#allocation98_spill] sm:$0xff] %v3052_v47  ;;  %v747_v20 = vadd.f32 %v3052_v47, %v3050_v1  ;;  %v418_v42 = vadd.f32 %v3056_v52, %v3054_v58 }
 0x145   :  { %v378_v26 = vpop.xlane.xlu0 %377  ;;  %4090 = vst [vmem:[#allocation100_spill] sm:$0xff] %v3056_v52  ;;  %v707_v48 = vpop.xlane.xlu2 %706  ;;  %v910_v7 = vmul.f32 %v862_v59, %v862_v59 }
 0x146   :  { %v761_v59 = vadd.f32 %v707_v48, %v375_v18  ;;  %v1103_v48 = vsub.f32 %v2804_v21, %v3058_v8 }
 0x147   :  { %v963_v31 = vadd.f32 %v910_v7, %v909_v9  ;;  %v3072_v47 = vpop.f32.mrf.mxu2  ;;  %v912_v7 = vmul.f32 %v864_v61, %v864_v61 }
 0x148   :  { %4091 = vst [vmem:[#allocation101_spill] sm:$0xff] %v3072_v47  ;;  %v3078_v9 = vmul.f32 0.001953125, %v761_v59 }
 0x14b   :  { %745 = vadd.xlane.f32.xlu0 %v744_v34  ;;  %416 = vadd.xlane.f32.xlu1 %v415_v56  ;;  %v1101_v34 = vsub.f32 %v2785_v14, %v3040_v62  ;;  %v1102_v56 = vsub.f32 %v2787_v15, %v3040_v62  ;;  %v3076_v15 = vpop.f32.mrf.mxu3 }
 0x14c   :  { %1201 = vadd.xlane.f32.xlu2 %v1200_v38  ;;  %4092 = vst [vmem:[#allocation102_spill] sm:$0xff] %v3076_v15  ;;  %v750_v18 = vadd.f32 %v3076_v15, %v3072_v47 }
 0x14d   :  { %v381_v45 = vpop.xlane.xlu1 %380  ;;  %v710_v57 = vpop.xlane.xlu0 %709  ;;  %v1149_v1 = vmul.f32 %v1101_v34, %v1101_v34  ;;  %v1150_v52 = vmul.f32 %v1102_v56, %v1102_v56 }
 0x14e   :  { %v762_v38 = vadd.f32 %v710_v57, %v378_v26  ;;  %v911_v57 = vmul.f32 %v863_v10, %v863_v10 }
 0x14f   :  { %v1203_v16 = vadd.f32 %v1150_v52, %v1149_v1  ;;  %v865_v1 = vsub.f32 %v2808_v23, %v3078_v9  ;;  %v866_v52 = vsub.f32 %v2810_v24, %v3078_v9  ;;  %v1105_v24 = vsub.f32 %v2816_v27, %v3078_v9 }
 0x150   :  { %v3074_v14 = vmul.f32 0.001953125, %v762_v38  ;;  %v966_v34 = vadd.f32 %v912_v7, %v911_v57  ;;  %v1151_v38 = vmul.f32 %v1103_v48, %v1103_v48 }
 0x151   :  { %v913_v7 = vmul.f32 %v865_v1, %v865_v1 }
 0x152   :  { %v867_v56 = vsub.f32 %v2820_v29, %v3074_v14  ;;  %v868_v10 = vsub.f32 %v2822_v30, %v3074_v14  ;;  %v1107_v23 = vsub.f32 %v2828_v35, %v3074_v14  ;;  %v1108_v48 = vsub.f32 %v2830_v40, %v3074_v14 }
 0x153   :  { %964 = vadd.xlane.f32.xlu0 %v963_v31  ;;  %748 = vadd.xlane.f32.xlu1 %v747_v20  ;;  %v1104_v20 = vsub.f32 %v2806_v22, %v3058_v8 }
 0x154   :  { %419 = vadd.xlane.f32.xlu2 %v418_v42  ;;  %v915_v59 = vmul.f32 %v867_v56, %v867_v56  ;;  %v916_v57 = vmul.f32 %v868_v10, %v868_v10  ;;  %v1153_v10 = vmul.f32 %v1105_v24, %v1105_v24 }
 0x155   :  { %v384_v58 = vpop.xlane.xlu2 %383  ;;  %v713_v26 = vpop.xlane.xlu1 %712  ;;  %v1152_v31 = vmul.f32 %v1104_v20, %v1104_v20 }
 0x156   :  { %v763_v42 = vadd.f32 %v713_v26, %v381_v45  ;;  %v914_v26 = vmul.f32 %v866_v52, %v866_v52 }
 0x157   :  { %v1206_v30 = vadd.f32 %v1152_v31, %v1151_v38  ;;  %v1155_v31 = vmul.f32 %v1107_v23, %v1107_v23 }
 0x158   :  { %v3094_v61 = vmul.f32 0.001953125, %v763_v42  ;;  %v969_v56 = vadd.f32 %v914_v26, %v913_v7 }
 0x15a   :  { %v869_v20 = vsub.f32 %v2832_v41, %v3094_v61  ;;  %v870_v42 = vsub.f32 %v2834_v46, %v3094_v61  ;;  %v1110_v24 = vsub.f32 %v2842_v54, %v3094_v61 }
 0x15b   :  { %1204 = vadd.xlane.f32.xlu0 %v1203_v16  ;;  %967 = vadd.xlane.f32.xlu1 %v966_v34  ;;  %v1106_v16 = vsub.f32 %v2818_v28, %v3078_v9 }
 0x15c   :  { %751 = vadd.xlane.f32.xlu2 %v750_v18  ;;  %v972_v18 = vadd.f32 %v916_v57, %v915_v59  ;;  %v1156_v59 = vmul.f32 %v1108_v48, %v1108_v48  ;;  %v917_v57 = vmul.f32 %v869_v20, %v869_v20  ;;  %v918_v35 = vmul.f32 %v870_v42, %v870_v42 }
 0x15d   :  { %v387_v45 = vpop.xlane.xlu0 %386  ;;  %v716_v29 = vpop.xlane.xlu2 %715  ;;  %v1154_v1 = vmul.f32 %v1106_v16, %v1106_v16  ;;  %v1158_v48 = vmul.f32 %v1110_v24, %v1110_v24 }
 0x15e   :  { %v764_v34 = vadd.f32 %v716_v29, %v384_v58  ;;  %v1212_v46 = vadd.f32 %v1156_v59, %v1155_v31  ;;  %v975_v29 = vadd.f32 %v918_v35, %v917_v57 }
 0x15f   :  { %v1209_v41 = vadd.f32 %v1154_v1, %v1153_v10  ;;  %v4093_v1 = vld [vmem:[#allocation52_spill] sm:$0xff] }
 0x160   :  { %v3108_v40 = vmul.f32 0.001953125, %v764_v34 }
 0x163   :  { %973 = vadd.xlane.f32.xlu0 %v972_v18  ;;  %1207 = vadd.xlane.f32.xlu1 %v1206_v30  ;;  %v1109_v30 = vsub.f32 %v2840_v53, %v3094_v61 }
 0x164   :  { %970 = vadd.xlane.f32.xlu2 %v969_v56 }
 0x165   :  { %v719_v52 = vpop.xlane.xlu0 %718  ;;  %v390_v38 = vpop.xlane.xlu1 %389  ;;  %v1157_v18 = vmul.f32 %v1109_v30, %v1109_v30 }
 0x166   :  { %v765_v28 = vadd.f32 %v719_v52, %v387_v45  ;;  %v871_v45 = vsub.f32 %v2844_v55, %v3108_v40 }
 0x167   :  { %v1215_v31 = vadd.f32 %v1158_v48, %v1157_v18 }
 0x168   :  { %v3110_v27 = vmul.f32 0.001953125, %v765_v28  ;;  %v872_v28 = vsub.f32 %v2846_v60, %v3108_v40  ;;  %v919_v42 = vmul.f32 %v871_v45, %v871_v45 }
 0x16a   :  { %v873_v23 = vsub.f32 %v2856_v5, %v3110_v27  ;;  %v874_v58 = vsub.f32 %v2858_v6, %v3110_v27  ;;  %v920_v34 = vmul.f32 %v872_v28, %v872_v28  ;;  %v1113_v10 = vsub.f32 %v2864_v13, %v3110_v27  ;;  %v4098_v6 = vld [vmem:[#allocation55_spill] sm:$0xff] }
 0x16b   :  { %1213 = vadd.xlane.f32.xlu0 %v1212_v46  ;;  %976 = vadd.xlane.f32.xlu1 %v975_v29  ;;  %v1114_v52 = vsub.f32 %v4093_v1, %v3110_v27  ;;  %v4095_v29 = vld [vmem:[#allocation53_spill] sm:$0xff] }
 0x16c   :  { %1210 = vadd.xlane.f32.xlu2 %v1209_v41  ;;  %v921_v26 = vmul.f32 %v873_v23, %v873_v23  ;;  %v922_v16 = vmul.f32 %v874_v58, %v874_v58  ;;  %v4094_v41 = vld [vmem:[#allocation47_spill] sm:$0xff]  ;;  %v978_v57 = vadd.f32 %v920_v34, %v919_v42  ;;  %v4097_v23 = vld [vmem:[#allocation48_spill] sm:$0xff]  ;;  %v1161_v45 = vmul.f32 %v1113_v10, %v1113_v10  ;;  %v4100_v10 = vld [vmem:[#allocation57_spill] sm:$0xff] }
 0x16d   :  { %v722_v35 = vpop.xlane.xlu1 %721  ;;  %v393_v7 = vpop.xlane.xlu2 %392  ;;  %v1111_v59 = vsub.f32 %v4094_v41, %v3108_v40  ;;  %v1112_v58 = vsub.f32 %v4097_v23, %v3108_v40  ;;  %v1162_v28 = vmul.f32 %v1114_v52, %v1114_v52 }
 0x16e   :  { %v766_v20 = vadd.f32 %v722_v35, %v390_v38  ;;  %v981_v46 = vadd.f32 %v922_v16, %v921_v26  ;;  %v4096_v38 = vld [vmem:[#allocation54_spill] sm:$0xff] }
 0x16f   :  { %v1159_v48 = vmul.f32 %v1111_v59, %v1111_v59  ;;  %v1221_v34 = vadd.f32 %v1162_v28, %v1161_v45  ;;  %v4101_v59 = vld [vmem:[#allocation58_spill] sm:$0xff] }
 0x170   :  { %v3124_v56 = vmul.f32 0.001953125, %v766_v20  ;;  %v1160_v20 = vmul.f32 %v1112_v58, %v1112_v58 }
 0x172   :  { %v875_v30 = vsub.f32 %v4095_v29, %v3124_v56  ;;  %v876_v24 = vsub.f32 %v4096_v38, %v3124_v56  ;;  %v1115_v5 = vsub.f32 %v4098_v6, %v3124_v56 }
 0x173   :  { %982 = vadd.xlane.f32.xlu0 %v981_v46  ;;  %1216 = vadd.xlane.f32.xlu1 %v1215_v31  ;;  %v4099_v46 = vld [vmem:[#allocation56_spill] sm:$0xff] }
 0x174   :  { %979 = vadd.xlane.f32.xlu2 %v978_v57  ;;  %v923_v26 = vmul.f32 %v875_v30, %v875_v30  ;;  %v924_v16 = vmul.f32 %v876_v24, %v876_v24  ;;  %v1116_v31 = vsub.f32 %v4099_v46, %v3124_v56  ;;  %v1218_v57 = vadd.f32 %v1160_v20, %v1159_v48 }
 0x175   :  { %v396_v35 = vpop.xlane.xlu0 %395  ;;  %v1163_v24 = vmul.f32 %v1115_v5, %v1115_v5  ;;  %v4105_v5 = vld [vmem:[#allocation61_spill] sm:$0xff] }
 0x176   :  { %v725_v18 = vpop.xlane.xlu2 %724  ;;  %v984_v13 = vadd.f32 %v924_v16, %v923_v26  ;;  %v1164_v58 = vmul.f32 %v1116_v31, %v1116_v31 }
 0x177   :  { %v767_v42 = vadd.f32 %v725_v18, %v393_v7 }
 0x179   :  { %v3138_v1 = vmul.f32 0.001953125, %v767_v42  ;;  %v1224_v42 = vadd.f32 %v1164_v58, %v1163_v24 }
 0x17b   :  { %1222 = vadd.xlane.f32.xlu0 %v1221_v34  ;;  %985 = vadd.xlane.f32.xlu1 %v984_v13  ;;  %v877_v52 = vsub.f32 %v4100_v10, %v3138_v1  ;;  %v878_v30 = vsub.f32 %v4101_v59, %v3138_v1  ;;  %v4102_v13 = vld [vmem:[#allocation59_spill] sm:$0xff]  ;;  %v4103_v34 = vld [vmem:[#allocation62_spill] sm:$0xff] }
 0x17c   :  { %1219 = vadd.xlane.f32.xlu2 %v1218_v57  ;;  %v1117_v20 = vsub.f32 %v4102_v13, %v3138_v1  ;;  %v1118_v10 = vsub.f32 %v4103_v34, %v3138_v1  ;;  %v4104_v57 = vld [vmem:[#allocation60_spill] sm:$0xff]  ;;  %v4107_v34 = vld [vmem:[#allocation66_spill] sm:$0xff] }
 0x17d   :  { %v399_v7 = vpop.xlane.xlu1 %398  ;;  %v925_v28 = vmul.f32 %v877_v52, %v877_v52  ;;  %v926_v26 = vmul.f32 %v878_v30, %v878_v30 }
 0x17e   :  { %v728_v45 = vpop.xlane.xlu0 %727  ;;  %v1165_v58 = vmul.f32 %v1117_v20, %v1117_v20 }
 0x17f   :  { %v768_v16 = vadd.f32 %v728_v45, %v396_v35  ;;  %v987_v48 = vadd.f32 %v926_v26, %v925_v28  ;;  %v1166_v28 = vmul.f32 %v1118_v10, %v1118_v10  ;;  %v4106_v26 = vld [vmem:[#allocation63_spill] sm:$0xff]  ;;  %v4108_v10 = vld [vmem:[#allocation64_spill] sm:$0xff] }
 0x181   :  { %v3148_v18 = vmul.f32 0.001953125, %v768_v16 }
 0x183   :  { %1225 = vadd.xlane.f32.xlu1 %v1224_v42  ;;  %v879_v59 = vsub.f32 %v4104_v57, %v3148_v18  ;;  %v880_v31 = vsub.f32 %v4105_v5, %v3148_v18  ;;  %v1119_v16 = vsub.f32 %v4106_v26, %v3148_v18  ;;  %v1120_v42 = vsub.f32 %v4107_v34, %v3148_v18  ;;  %v4109_v26 = vld [vmem:[#allocation65_spill] sm:$0xff] }
 0x184   :  { %988 = vadd.xlane.f32.xlu2 %v987_v48  ;;  %v2469_v5 = vmov 0   ;;  %v1227_v48 = vadd.f32 %v1166_v28, %v1165_v58 }
 0x185   :  { %v402_v52 = vpop.xlane.xlu2 %401  ;;  %v927_v35 = vmul.f32 %v879_v59, %v879_v59  ;;  %v928_v30 = vmul.f32 %v880_v31, %v880_v31  ;;  %2393 = vset.pattern.permute.xlu1 %v2469_v5  ;;  %v1167_v59 = vmul.f32 %v1119_v16, %v1119_v16  ;;  %v1168_v31 = vmul.f32 %v1120_v42, %v1120_v42 }
 0x186   :  { %v947_v45 = vpop.xlane.xlu0 %946  ;;  %v731_v24 = vpop.xlane.xlu1 %730  ;;  %2392 = vset.pattern.permute.xlu0 %v2469_v5  ;;  %2394 = vset.pattern.permute.xlu2 %v2469_v5  ;;  %v4110_v5 = vld [vmem:[#allocation71_spill] sm:$0xff] }
 0x187   :  { %v769_v13 = vadd.f32 %v731_v24, %v399_v7  ;;  %v990_v23 = vadd.f32 %v928_v30, %v927_v35  ;;  %v1230_v30 = vadd.f32 %v1168_v31, %v1167_v59  ;;  %v4111_v59 = vld [vmem:[#allocation69_spill] sm:$0xff] }
 0x189   :  { %v3162_v57 = vmul.f32 0.001953125, %v769_v13  ;;  %991 = vadd.xlane.f32.xlu0 %v990_v23 }
 0x18b   :  { %v881_v20 = vsub.f32 %v4108_v10, %v3162_v57  ;;  %v882_v41 = vsub.f32 %v4109_v26, %v3162_v57  ;;  %v1121_v58 = vsub.f32 %v2918_v12, %v3162_v57  ;;  %v1122_v28 = vsub.f32 %v4110_v5, %v3162_v57 }
 0x18c   :  { %1228 = vadd.xlane.f32.xlu2 %v1227_v48 }
 0x18d   :  { %v929_v34 = vmul.f32 %v881_v20, %v881_v20  ;;  %v930_v7 = vmul.f32 %v882_v41, %v882_v41  ;;  %v1169_v41 = vmul.f32 %v1121_v58, %v1121_v58  ;;  %v1170_v20 = vmul.f32 %v1122_v28, %v1122_v28  ;;  %v4113_v28 = vld [vmem:[#allocation75_spill] sm:$0xff] }
 0x18e   :  { %v1187_v35 = vpop.xlane.xlu0 %1186  ;;  %v950_v13 = vpop.xlane.xlu1 %949 }
 0x18f   :  { %v1257_v23 = vadd.f32 %v1187_v35, %v947_v45  ;;  %v734_v24 = vpop.xlane.xlu2 %733  ;;  %v993_v60 = vadd.f32 %v930_v7, %v929_v34  ;;  %v4112_v34 = vld [vmem:[#allocation70_spill] sm:$0xff] }
 0x190   :  { %v770_v16 = vadd.f32 %v734_v24, %v402_v52 }
 0x191   :  { %v1281_v42 = vmul.f32 0.001953125, %v1257_v23  ;;  %1231 = vadd.xlane.f32.xlu0 %v1230_v30  ;;  %994 = vadd.xlane.f32.xlu1 %v993_v60  ;;  %v1233_v60 = vadd.f32 %v1170_v20, %v1169_v41 }
 0x192   :  { %v3172_v26 = vmul.f32 0.001953125, %v770_v16 }
 0x193   :  { %v1305_v48 = vadd.f32 0.001, %v1281_v42 }
 0x194   :  { %v883_v45 = vsub.f32 %v4111_v59, %v3172_v26  ;;  %v884_v31 = vsub.f32 %v4112_v34, %v3172_v26  ;;  %v1123_v58 = vsub.f32 %v2940_v25, %v3172_v26  ;;  %v1124_v16 = vsub.f32 %v4113_v28, %v3172_v26 }
 0x195   :  { %2395 = vrsqrt.f32 %v1305_v48  ;;  %vm1335_vm2 = vweird.f32 %v1305_v48 }
 0x196   :  { %v1190_v7 = vpop.xlane.xlu1 %1189  ;;  %v3178_v35 = vpop.xlane.xlu0 %404  ;;  %v931_v5 = vmul.f32 %v883_v45, %v883_v45  ;;  %v932_v52 = vmul.f32 %v884_v31, %v884_v31  ;;  %v1171_v10 = vmul.f32 %v1123_v58, %v1123_v58  ;;  %v1172_v55 = vmul.f32 %v1124_v16, %v1124_v16 }
 0x197   :  { %v1258_v23 = vadd.f32 %v1190_v7, %v950_v13  ;;  %v953_v30 = vpop.xlane.xlu2 %952 }
 0x198   :  { %v996_v24 = vadd.f32 %v932_v52, %v931_v5  ;;  %v1236_v7 = vadd.f32 %v1172_v55, %v1171_v10 }
 0x199   :  { %v1282_v42 = vmul.f32 0.001953125, %v1258_v23  ;;  %1234 = vadd.xlane.f32.xlu1 %v1233_v60 }
 0x19a   :  { %997 = vadd.xlane.f32.xlu2 %v996_v24 }
 0x19b   :  { %v2396_v34 = vpop.eup %2395  ;;  %v1306_v59 = vadd.f32 0.001, %v1282_v42 }
 0x19c   :  { %v1330_v12 = vmul.f32 %v2396_v34, %v1305_v48  ;;  %vm1336_vm1 = vweird.f32 %v2396_v34 }
 0x19d   :  { %2397 = vrsqrt.f32 %v1306_v59  ;;  %vm1337_vm3 = vmor %vm1335_vm2, %vm1336_vm1  ;;  %vm1345_vm5 = vweird.f32 %v1306_v59 }
 0x19e   :  { %v1331_v45 = vmul.f32 %v2396_v34, %v1330_v12  ;;  %v737_v13 = vpop.xlane.xlu0 %736  ;;  %v3184_v31 = vpop.xlane.xlu1 %407  ;;  %v1569_v12 = vld [vmem:[%s3870_s2] sm:$0xff] }
 0x19f   :  { %v1193_v5 = vpop.xlane.xlu2 %1192 }
 0x1a0   :  { %v1332_v41 = vmul.f32 0.5, %v1331_v45  ;;  %v1259_v20 = vadd.f32 %v1193_v5, %v953_v30 }
 0x1a2   :  { %v1333_v52 = vsub.f32 1.5, %v1332_v41  ;;  %v1283_v28 = vmul.f32 0.001953125, %v1259_v20  ;;  %1237 = vadd.xlane.f32.xlu2 %v1236_v7  ;;  %v4114_v41 = vld [vmem:[#allocation67_spill] sm:$0xff] }
 0x1a3   :  { %v2398_v23 = vpop.eup %2397 }
 0x1a4   :  { %v1340_v60 = vmul.f32 %v2398_v23, %v1306_v59  ;;  %v1307_v24 = vadd.f32 0.001, %v1283_v28  ;;  %v1334_v42 = vmul.f32 %v2396_v34, %v1333_v52  ;;  %v1617_v28 = vld [vmem:[%s3871_s3] sm:$0xff]  ;;  %vm1346_vm4 = vweird.f32 %v2398_v23 }
 0x1a5   :  { %vm1347_vm7 = vmor %vm1345_vm5, %vm1346_vm4 }
 0x1a6   :  { %v1341_v58 = vmul.f32 %v2398_v23, %v1340_v60  ;;  %2399 = vrsqrt.f32 %v1307_v24  ;;  %v956_v16 = vpop.xlane.xlu0 %955  ;;  %v740_v45 = vpop.xlane.xlu1 %739  ;;  %v1338_v30 = vsel %vm1337_vm3, %v2396_v34, %v1334_v42  ;;  %vm1355_vm8 = vweird.f32 %v1307_v24 }
 0x1a7   :  { %v1593_v55 = vmul.f32 %v1569_v12, %v1338_v30 }
 0x1a8   :  { %v1342_v10 = vmul.f32 0.5, %v1341_v58  ;;  %v1571_v58 = vld [vmem:[%s3870_s2 + $0x10] sm:$0xff] }
 0x1a9   :  { %1691 = vperm.xlu0 %2392, %v1593_v55   ;;  %v1641_v20 = vmul.f32 %v1593_v55, %v4114_v41  ;;  %v1570_v55 = vld [vmem:[%s3870_s2 + $0x8] sm:$0xff] }
 0x1aa   :  { %v1343_v48 = vsub.f32 1.5, %v1342_v10 }
 0x1ab   :  { %v1665_v46 = vsub.f32 %v1617_v28, %v1641_v20  ;;  %v771_v20 = vadd.f32 %v737_v13, %v3178_v35 }
 0x1ac   :  { %v2400_v5 = vpop.eup %2399  ;;  %v1344_v34 = vmul.f32 %v2398_v23, %v1343_v48  ;;  %v411_v48 = vpop.xlane.xlu2 %410 }
 0x1ad   :  { %v1350_v7 = vmul.f32 %v2400_v5, %v1307_v24  ;;  %vm1356_vm6 = vweird.f32 %v2400_v5 }
 0x1ae   :  { %v1196_v52 = vpop.xlane.xlu0 %1195  ;;  %v3193_v25 = vpop.xlane.xlu1 %958  ;;  %v1348_v30 = vsel %vm1347_vm7, %v2398_v23, %v1344_v34  ;;  %vm1357_vm9 = vmor %vm1355_vm8, %vm1356_vm6 }
 0x1af   :  { %v1351_v60 = vmul.f32 %v2400_v5, %v1350_v7  ;;  %v3212_v7 = vmul.f32 0.001953125, %v771_v20 }
 0x1b1   :  { %v1352_v6 = vmul.f32 0.5, %v1351_v60  ;;  %v1125_v20 = vsub.f32 %v2962_v63, %v3212_v7 }
 0x1b2   :  { %1859 = vperm.xlu1 %2393, %v1665_v46  }
 0x1b3   :  { %v1353_v42 = vsub.f32 1.5, %v1352_v6  ;;  %v3205_v6 = vmul.f32 %v1570_v55, %v1348_v30 }
 0x1b4   :  { %v743_v30 = vpop.xlane.xlu2 %742 }
 0x1b5   :  { %v1354_v12 = vmul.f32 %v2400_v5, %v1353_v42  ;;  %v886_v42 = vsub.f32 %v2950_v39, %v3212_v7  ;;  %v773_v35 = vadd.f32 %v743_v30, %v411_v48 }
 0x1b6   :  { %v1199_v10 = vpop.xlane.xlu1 %1198  ;;  %v3201_v41 = vpop.xlane.xlu0 %413 }
 0x1b7   :  { %v1358_v46 = vsel %vm1357_vm9, %v2400_v5, %v1354_v12  ;;  %v885_v5 = vsub.f32 %v2948_v19, %v3212_v7  ;;  %v3227_v39 = vmul.f32 0.001953125, %v773_v35 }
 0x1b8   :  { %v3203_v59 = vmul.f32 %v1571_v58, %v1358_v46  ;;  %v934_v58 = vmul.f32 %v886_v42, %v886_v42  ;;  %v1260_v46 = vadd.f32 %v1196_v52, %v956_v16 }
 0x1b9   :  { %v933_v12 = vmul.f32 %v885_v5, %v885_v5  ;;  %v1173_v5 = vmul.f32 %v1125_v20, %v1125_v20  ;;  %v1261_v20 = vadd.f32 %v1199_v10, %v3193_v25 }
 0x1ba   :  { %1701 = vperm.xlu2 %2394, %v3203_v59   ;;  %1696 = vperm.xlu1 %2393, %v3205_v6   ;;  %v1284_v19 = vmul.f32 0.001953125, %v1260_v46 }
 0x1bb   :  { %v999_v13 = vadd.f32 %v934_v58, %v933_v12  ;;  %v889_v58 = vsub.f32 %v2990_v33, %v3227_v39  ;;  %v1285_v10 = vmul.f32 0.001953125, %v1261_v20  ;;  %v1618_v20 = vld [vmem:[%s3871_s3 + $0x8] sm:$0xff] }
 0x1bc   :  { %v3231_v52 = vadd.f32 0.001, %v1284_v19  ;;  %v962_v48 = vpop.xlane.xlu2 %961 }
 0x1bd   :  { %v937_v19 = vmul.f32 %v889_v58, %v889_v58 }
 0x1be   :  { %v3209_v24 = vpop.xlane.xlu0 %745  ;;  %v417_v23 = vpop.xlane.xlu1 %416  ;;  %2401 = vrsqrt.f32 %v3231_v52  ;;  %vm1365_vm11 = vweird.f32 %v3231_v52 }
 0x1c4   :  { %v1202_v63 = vpop.xlane.xlu2 %1201 }
 0x1c6   :  { %v965_v28 = vpop.xlane.xlu0 %964  ;;  %v749_v60 = vpop.xlane.xlu1 %748 }
 0x1c7   :  { %v3214_v34 = vadd.f32 %v749_v60, %v417_v23  ;;  %v1126_v23 = vsub.f32 %v2964_v44, %v3212_v7  ;;  %v772_v60 = vadd.f32 %v740_v45, %v3184_v31  ;;  %v890_v31 = vsub.f32 %v2992_v50, %v3227_v39 }
 0x1c8   :  { %v1130_v44 = vsub.f32 %v3008_v11, %v3227_v39 }
 0x1c9   :  { %v1174_v42 = vmul.f32 %v1126_v23, %v1126_v23  ;;  %v3229_v29 = vmul.f32 0.001953125, %v772_v60  ;;  %v2402_v60 = vpop.eup %2401 }
 0x1ca   :  { %vm1366_vm10 = vweird.f32 %v2402_v60 }
 0x1cb   :  { %v1239_v12 = vadd.f32 %v1174_v42, %v1173_v5  ;;  %v887_v45 = vsub.f32 %v2970_v4, %v3229_v29  ;;  %v888_v30 = vsub.f32 %v2972_v36, %v3229_v29  ;;  %v1129_v42 = vsub.f32 %v3006_v49, %v3227_v39  ;;  %v4116_v36 = vld [vmem:[#allocation72_spill] sm:$0xff]  ;;  %vm1367_vm12 = vmor %vm1365_vm11, %vm1366_vm10 }
 0x1cc   :  { %v1127_v58 = vsub.f32 %v2984_v43, %v3229_v29  ;;  %v1309_v49 = vadd.f32 0.001, %v1285_v10  ;;  %v1642_v43 = vmul.f32 %v3205_v6, %v4116_v36 }
 0x1cd   :  { %v935_v35 = vmul.f32 %v887_v45, %v887_v45  ;;  %v1262_v45 = vadd.f32 %v1202_v63, %v962_v48  ;;  %v3263_v48 = vpop.xlane.xlu2 %419 }
 0x1ce   :  { %v1205_v55 = vpop.xlane.xlu0 %1204  ;;  %2403 = vrsqrt.f32 %v1309_v49  ;;  %vm1375_vm14 = vweird.f32 %v1309_v49 }
 0x1cf   :  { %v3220_v38 = vadd.f32 %v1205_v55, %v965_v28  ;;  %v3233_v28 = vpop.xlane.xlu1 %967  ;;  %v938_v55 = vmul.f32 %v890_v31, %v890_v31  ;;  %v4115_v31 = vld [vmem:[#allocation84_spill] sm:$0xff] }
 0x1d0   :  { %v1128_v25 = vsub.f32 %v4115_v31, %v3229_v29 }
 0x1d1   :  { %v1005_v5 = vadd.f32 %v938_v55, %v937_v19  ;;  %v1178_v19 = vmul.f32 %v1130_v44, %v1130_v44 }
 0x1d2   :  { %v1176_v11 = vmul.f32 %v1128_v25, %v1128_v25 }
 0x1d3   :  { %1000 = vadd.xlane.f32.xlu0 %v999_v13  ;;  %v936_v13 = vmul.f32 %v888_v30, %v888_v30  ;;  %v1177_v30 = vmul.f32 %v1129_v42, %v1129_v42  ;;  %v1666_v42 = vsub.f32 %v1618_v20, %v1642_v43  ;;  %v1619_v20 = vld [vmem:[%s3871_s3 + $0x10] sm:$0xff] }
 0x1d6   :  { %v974_v16 = vpop.xlane.xlu0 %973 }
 0x1d7   :  { %v3251_v50 = vpop.xlane.xlu1 %1207 }
 0x1db   :  { %1240 = vadd.xlane.f32.xlu0 %v1239_v12  ;;  %v1002_v12 = vadd.f32 %v936_v13, %v935_v35  ;;  %v1286_v35 = vmul.f32 0.001953125, %v1262_v45  ;;  %v1245_v13 = vadd.f32 %v1178_v19, %v1177_v30  ;;  %v1572_v45 = vld [vmem:[%s3870_s2 + $0x18] sm:$0xff] }
 0x1de   :  { %v1214_v46 = vpop.xlane.xlu0 %1213 }
 0x1df   :  { %v3245_v23 = vadd.f32 %v1214_v46, %v974_v16  ;;  %v1360_v16 = vmul.f32 %v2402_v60, %v3231_v52  ;;  %v1175_v46 = vmul.f32 %v1127_v58, %v1127_v58  ;;  %v3265_v44 = vpop.xlane.xlu1 %976 }
 0x1e1   :  { %v1361_v33 = vmul.f32 %v2402_v60, %v1360_v16  ;;  %v1242_v4 = vadd.f32 %v1176_v11, %v1175_v46  ;;  %v2404_v11 = vpop.eup %2403 }
 0x1e2   :  { %v1370_v25 = vmul.f32 %v2404_v11, %v1309_v49  ;;  %vm1376_vm13 = vweird.f32 %v2404_v11 }
 0x1e3   :  { %1006 = vadd.xlane.f32.xlu2 %v1005_v5  ;;  %v1362_v63 = vmul.f32 0.5, %v1361_v33  ;;  %v1310_v5 = vadd.f32 0.001, %v1286_v35  ;;  %v3270_v33 = vpop.xlane.xlu2 %751  ;;  %v4117_v35 = vld [vmem:[#allocation74_spill] sm:$0xff]  ;;  %vm1377_vm15 = vmor %vm1375_vm14, %vm1376_vm13 }
 0x1e4   :  { %1003 = vadd.xlane.f32.xlu1 %v1002_v12 }
 0x1e5   :  { %v1363_v36 = vsub.f32 1.5, %v1362_v63  ;;  %2405 = vrsqrt.f32 %v1310_v5  ;;  %v4118_v63 = vld [vmem:[#allocation82_spill] sm:$0xff]  ;;  %vm1385_vm1 = vweird.f32 %v1310_v5 }
 0x1e6   :  { %v983_v55 = vpop.xlane.xlu0 %982 }
 0x1e7   :  { %v1364_v6 = vmul.f32 %v2402_v60, %v1363_v36  ;;  %v3272_v10 = vpop.xlane.xlu1 %1216 }
 0x1e9   :  { %v1368_v43 = vsel %vm1367_vm12, %v2402_v60, %v1364_v6  ;;  %v1620_v6 = vld [vmem:[%s3871_s3 + $0x18] sm:$0xff] }
 0x1ea   :  { %v1596_v19 = vmul.f32 %v1572_v45, %v1368_v43 }
 0x1eb   :  { %1246 = vadd.xlane.f32.xlu2 %v1245_v13  ;;  %v2406_v16 = vpop.eup %2405  ;;  %v1643_v13 = vmul.f32 %v3203_v59, %v4117_v35  ;;  %v3283_v60 = vpop.xlane.xlu2 %970  ;;  %v774_v35 = vadd.f32 %v3209_v24, %v3201_v41  ;;  %v1574_v41 = vld [vmem:[%s3870_s2 + $0x28] sm:$0xff]  ;;  %v1264_v24 = vadd.f32 %v3251_v50, %v3233_v28 }
 0x1ec   :  { %1243 = vadd.xlane.f32.xlu1 %v1242_v4  ;;  %v1371_v4 = vmul.f32 %v2404_v11, %v1370_v25  ;;  %v1380_v30 = vmul.f32 %v2406_v16, %v1310_v5  ;;  %vm1386_vm0 = vweird.f32 %v2406_v16 }
 0x1ed   :  { %v1667_v25 = vsub.f32 %v1619_v20, %v1643_v13  ;;  %v1573_v13 = vld [vmem:[%s3870_s2 + $0x20] sm:$0xff]  ;;  %vm1387_vm2 = vmor %vm1385_vm1, %vm1386_vm0  ;;  %v1288_v5 = vmul.f32 0.001953125, %v1264_v24 }
 0x1ee   :  { %v1223_v12 = vpop.xlane.xlu0 %1222  ;;  %v1381_v52 = vmul.f32 %v2406_v16, %v1380_v30 }
 0x1ef   :  { %v3267_v58 = vadd.f32 %v1223_v12, %v983_v55  ;;  %1864 = vperm.xlu0 %2392, %v1666_v42   ;;  %v1372_v55 = vmul.f32 0.5, %v1371_v4  ;;  %v1644_v42 = vmul.f32 %v1596_v19, %v4118_v63  ;;  %v3285_v36 = vpop.xlane.xlu1 %985 }
 0x1f0   :  { %v1382_v4 = vmul.f32 0.5, %v1381_v52 }
 0x1f1   :  { %v1373_v12 = vsub.f32 1.5, %v1372_v55  ;;  %v1668_v59 = vsub.f32 %v1620_v6, %v1644_v42 }
 0x1f2   :  { %v1383_v55 = vsub.f32 1.5, %v1382_v4 }
 0x1f3   :  { %v1374_v45 = vmul.f32 %v2404_v11, %v1373_v12  ;;  %v3297_v52 = vpop.xlane.xlu2 %1210  ;;  %v3299_v12 = vmul.f32 0.001953125, %v774_v35 }
 0x1f4   :  { %v1384_v42 = vmul.f32 %v2406_v16, %v1383_v55 }
 0x1f5   :  { %v1378_v63 = vsel %vm1377_vm15, %v2404_v11, %v1374_v45  ;;  %v891_v11 = vsub.f32 %v3014_v32, %v3299_v12  ;;  %v892_v6 = vsub.f32 %v3016_v51, %v3299_v12  ;;  %v1131_v28 = vsub.f32 %v3028_v0, %v3299_v12 }
 0x1f6   :  { %v1388_v49 = vsel %vm1387_vm2, %v2406_v16, %v1384_v42  ;;  %v1132_v45 = vsub.f32 %v3030_v2, %v3299_v12  ;;  %v1267_v42 = vadd.f32 %v3272_v10, %v3265_v44  ;;  %v4122_v2 = vld [vmem:[#allocation9_spill] sm:$0xff] }
 0x1f7   :  { %v1226_v20 = vpop.xlane.xlu1 %1225  ;;  %v939_v16 = vmul.f32 %v891_v11, %v891_v11  ;;  %v940_v4 = vmul.f32 %v892_v6, %v892_v6  ;;  %v1179_v55 = vmul.f32 %v1131_v28, %v1131_v28  ;;  %v4119_v6 = vld [vmem:[#allocation6_spill] sm:$0xff] }
 0x1f8   :  { %v1180_v35 = vmul.f32 %v1132_v45, %v1132_v45  ;;  %v1291_v11 = vmul.f32 0.001953125, %v1267_v42 }
 0x1f9   :  { %v1008_v50 = vadd.f32 %v940_v4, %v939_v16  ;;  %v4120_v16 = vld [vmem:[#allocation7_spill] sm:$0xff] }
 0x1fc   :  { %v992_v46 = vpop.xlane.xlu0 %991 }
 0x203   :  { %1869 = vperm.xlu2 %2394, %v1667_v25   ;;  %v3310_v25 = vmul.f32 %v1574_v41, %v1388_v49  ;;  %v1248_v49 = vadd.f32 %v1180_v35, %v1179_v55  ;;  %v3338_v35 = vadd.f32 0.001, %v1291_v11 }
 0x204   :  { %v1232_v43 = vpop.xlane.xlu0 %1231 }
 0x205   :  { %v3290_v30 = vadd.f32 %v1232_v43, %v992_v46  ;;  %1874 = vperm.xlu1 %2393, %v1668_v59   ;;  %v1597_v46 = vmul.f32 %v1573_v13, %v1378_v63  ;;  %v3315_v59 = vpop.xlane.xlu2 %979  ;;  %v3317_v43 = vadd.f32 0.001, %v1288_v5  ;;  %vm1435_vm7 = vweird.f32 %v3338_v35 }
 0x207   :  { %2407 = vrsqrt.f32 %v3317_v43  ;;  %vm1405_vm4 = vweird.f32 %v3317_v43 }
 0x208   :  { %2409 = vrsqrt.f32 %v3338_v35 }
 0x20b   :  { %1706 = vperm.xlu2 %2394, %v1596_v19   ;;  %v3312_v19 = vpop.xlane.xlu1 %994 }
 0x20d   :  { %1711 = vperm.xlu1 %2393, %v1597_v46   ;;  %v3326_v13 = vpop.xlane.xlu2 %1219  ;;  %v3330_v24 = vpop.eup %2407 }
 0x20e   :  { %v1400_v45 = vmul.f32 %v3330_v24, %v3317_v43  ;;  %vm1406_vm3 = vweird.f32 %v3330_v24  ;;  %v1290_v43 = vmul.f32 0.001953125, %v3245_v23 }
 0x20f   :  { %vm3383_vm5 = vmor %vm1405_vm4, %vm1406_vm3 }
 0x210   :  { %v1401_v42 = vmul.f32 %v3330_v24, %v1400_v45 }
 0x213   :  { %1716 = vperm.xlu2 %2394, %v3310_v25   ;;  %v3324_v63 = vpop.xlane.xlu1 %1234 }
 0x219   :  { %1009 = vadd.xlane.f32.xlu0 %v1008_v50  ;;  %v4121_v50 = vld [vmem:[#allocation8_spill] sm:$0xff] }
 0x21b   :  { %v1692_v41 = vpop.permute.xlu0 %1691 }
 0x21c   :  { %v1809_v5 = vmul.f32 %v1692_v41, %v4119_v6  ;;  %v1810_v4 = vmul.f32 %v1692_v41, %v4120_v16  ;;  %v2121_v28 = vmul.f32 %v1692_v41, %v4121_v50  ;;  %v2122_v0 = vmul.f32 %v1692_v41, %v4122_v2 }
 0x21d   :  { %v3344_v6 = vmul.f32 0.001953125, %v3214_v34  ;;  %v776_v2 = vadd.f32 %v3270_v33, %v3263_v48  ;;  %v1270_v34 = vadd.f32 %v1226_v20, %v3285_v36  ;;  %v3363_v33 = vpop.eup %2409  ;;  %v1265_v50 = vadd.f32 %v3297_v52, %v3283_v60  ;;  %v4124_v36 = vld [vmem:[#allocation99_spill] sm:$0xff] }
 0x21e   :  { %vm1436_vm6 = vweird.f32 %v3363_v33 }
 0x21f   :  { %v894_v41 = vsub.f32 %v3034_v37, %v3344_v6  ;;  %v3354_v11 = vmul.f32 0.001953125, %v776_v2  ;;  %v1430_v2 = vmul.f32 %v3363_v33, %v3338_v35  ;;  %v1289_v52 = vmul.f32 0.001953125, %v1265_v50  ;;  %vm1437_vm8 = vmor %vm1435_vm7, %vm1436_vm6 }
 0x221   :  { %1249 = vadd.xlane.f32.xlu0 %v1248_v49  ;;  %v3341_v49 = vpop.xlane.xlu2 %988  ;;  %v942_v45 = vmul.f32 %v894_v41, %v894_v41  ;;  %v895_v20 = vsub.f32 %v4124_v36, %v3354_v11  ;;  %v4127_v41 = vld [vmem:[#allocation98_spill] sm:$0xff] }
 0x224   :  { %v1860_v51 = vpop.permute.xlu1 %1859 }
 0x225   :  { %v1977_v32 = vadd.f32 %v1860_v51, %v1809_v5  ;;  %v1978_v44 = vadd.f32 %v1860_v51, %v1810_v4  ;;  %v2169_v10 = vadd.f32 %v2121_v28, %v1860_v51  ;;  %v2170_v55 = vadd.f32 %v2122_v0, %v1860_v51  ;;  %v4123_v5 = vld [vmem:[#allocation85_spill] sm:$0xff] }
 0x226   :  { %v1287_v0 = vmul.f32 0.001953125, %v3220_v38  ;;  %v1402_v51 = vmul.f32 0.5, %v1401_v42  ;;  %v1645_v16 = vmul.f32 %v1597_v46, %v4123_v5  ;;  %v1621_v38 = vld [vmem:[%s3871_s3 + $0x20] sm:$0xff]  ;;  %v4125_v46 = vld [vmem:[#allocation100_spill] sm:$0xff]  ;;  %v1134_v5 = vsub.f32 %v4127_v41, %v3344_v6 }
 0x227   :  { %2025 = vst [vmem:[#allocation3] sm:$0xff] %v1977_v32  ;;  %v893_v32 = vsub.f32 %v3032_v3, %v3344_v6 }
 0x228   :  { %2026 = vst [vmem:[#allocation3 + $0x8] sm:$0xff] %v1978_v44  ;;  %v3358_v4 = vadd.f32 0.001, %v1287_v0  ;;  %v1403_v48 = vsub.f32 1.5, %v1402_v51  ;;  %v1669_v42 = vsub.f32 %v1621_v38, %v1645_v16  ;;  %v4126_v51 = vld [vmem:[#allocation97_spill] sm:$0xff] }
 0x229   :  { %2218 = vst [vmem:[#allocation3 + $0x180] sm:$0xff] %v2169_v10  ;;  %v941_v28 = vmul.f32 %v893_v32, %v893_v32  ;;  %v3367_v44 = vpop.xlane.xlu2 %1228  ;;  %v896_v10 = vsub.f32 %v4125_v46, %v3354_v11  ;;  %v1133_v32 = vsub.f32 %v4126_v51, %v3344_v6 }
 0x22a   :  { %2219 = vst [vmem:[#allocation3 + $0x188] sm:$0xff] %v2170_v55  ;;  %v1294_v55 = vmul.f32 0.001953125, %v1270_v34  ;;  %2411 = vrsqrt.f32 %v3358_v4  ;;  %v1404_v60 = vmul.f32 %v3330_v24, %v1403_v48  ;;  %v943_v34 = vmul.f32 %v895_v20, %v895_v20 }
 0x22b   :  { %v1011_v0 = vadd.f32 %v942_v45, %v941_v28  ;;  %v944_v16 = vmul.f32 %v896_v10, %v896_v10  ;;  %v1431_v48 = vmul.f32 %v3363_v33, %v1430_v2  ;;  %v1576_v28 = vld [vmem:[%s3870_s2 + $0x38] sm:$0xff]  ;;  %v3397_v45 = vadd.f32 0.001, %v1289_v52 }
 0x22c   :  { %v3387_v37 = vadd.f32 0.001, %v1294_v55  ;;  %v1408_v50 = vsel %vm3383_vm5, %v3330_v24, %v1404_v60  ;;  %v1181_v20 = vmul.f32 %v1133_v32, %v1133_v32  ;;  %v1182_v10 = vmul.f32 %v1134_v5, %v1134_v5 }
 0x22d   :  { %v1135_v2 = vsub.f32 %v3072_v47, %v3354_v11  ;;  %v1136_v24 = vsub.f32 %v3076_v15, %v3354_v11  ;;  %v1600_v60 = vmul.f32 %v1576_v28, %v1408_v50  ;;  %v1432_v38 = vmul.f32 0.5, %v1431_v48  ;;  %v1624_v48 = vld [vmem:[%s3871_s3 + $0x38] sm:$0xff] }
 0x22e   :  { %2413 = vrsqrt.f32 %v3387_v37  ;;  %v3410_v52 = vadd.f32 0.001, %v1290_v43  ;;  %v1251_v32 = vadd.f32 %v1182_v10, %v1181_v20  ;;  %v1268_v20 = vadd.f32 %v3326_v13, %v3315_v59 }
 0x22f   :  { %2415 = vrsqrt.f32 %v3397_v45  ;;  %v1183_v5 = vmul.f32 %v1135_v2, %v1135_v2  ;;  %v1648_v41 = vmul.f32 %v1600_v60, %v3058_v8  ;;  %v1433_v50 = vsub.f32 1.5, %v1432_v38 }
 0x230   :  { %2417 = vrsqrt.f32 %v3410_v52  ;;  %v1292_v13 = vmul.f32 0.001953125, %v1268_v20  ;;  %vm1395_vm10 = vweird.f32 %v3358_v4  ;;  %vm1465_vm14 = vweird.f32 %v3387_v37 }
 0x231   :  { %v3401_v55 = vpop.xlane.xlu2 %997  ;;  %vm1415_vm0 = vweird.f32 %v3397_v45  ;;  %vm1425_vm3 = vweird.f32 %v3410_v52 }
 0x235   :  { %1879 = vperm.xlu0 %2392, %v1669_v42   ;;  %v3399_v42 = vpop.eup %2411 }
 0x236   :  { %v1390_v23 = vmul.f32 %v3399_v42, %v3358_v4  ;;  %v3419_v28 = vpop.eup %2413  ;;  %vm1396_vm9 = vweird.f32 %v3399_v42  ;;  %v1271_v4 = vadd.f32 %v3367_v44, %v3341_v49  ;;  %v1622_v44 = vld [vmem:[%s3871_s3 + $0x28] sm:$0xff] }
 0x237   :  { %1012 = vadd.xlane.f32.xlu1 %v1011_v0  ;;  %v1014_v0 = vadd.f32 %v944_v16, %v943_v34  ;;  %v1184_v34 = vmul.f32 %v1136_v24, %v1136_v24  ;;  %v1273_v16 = vadd.f32 %v3324_v63, %v3312_v19  ;;  %v1672_v63 = vsub.f32 %v1624_v48, %v1648_v41  ;;  %vm1397_vm11 = vmor %vm1395_vm10, %vm1396_vm9 }
 0x238   :  { %v1391_v43 = vmul.f32 %v3399_v42, %v1390_v23  ;;  %v1460_v8 = vmul.f32 %v3419_v28, %v3387_v37  ;;  %v1434_v24 = vmul.f32 %v3363_v33, %v1433_v50  ;;  %v1293_v50 = vmul.f32 0.001953125, %v3267_v58  ;;  %v3460_v58 = vpop.permute.xlu1 %1696 }
 0x239   :  { %v1254_v10 = vadd.f32 %v1184_v34, %v1183_v5  ;;  %v1297_v19 = vmul.f32 0.001953125, %v1273_v16  ;;  %v3430_v2 = vpop.xlane.xlu2 %1237  ;;  %v1579_v5 = vld [vmem:[%s3870_s2 + $0x50] sm:$0xff]  ;;  %v3449_v48 = vadd.f32 0.001, %v1292_v13  ;;  %vm1466_vm12 = vweird.f32 %v3419_v28 }
 0x23a   :  { %v1461_v23 = vmul.f32 %v3419_v28, %v1460_v8  ;;  %v1627_v13 = vld [vmem:[%s3871_s3 + $0x50] sm:$0xff]  ;;  %vm3498_vm15 = vmor %vm1465_vm14, %vm1466_vm12 }
 0x23b   :  { %v3438_v41 = vadd.f32 0.001, %v1297_v19  ;;  %vm1445_vm9 = vweird.f32 %v3449_v48 }
 0x23c   :  { %1015 = vadd.xlane.f32.xlu2 %v1014_v0  ;;  %v3425_v0 = vpop.eup %2415  ;;  %v1462_v20 = vmul.f32 0.5, %v1461_v23 }
 0x23d   :  { %1726 = vperm.xlu0 %2392, %v1600_v60   ;;  %v1392_v60 = vmul.f32 0.5, %v1391_v43  ;;  %v1410_v59 = vmul.f32 %v3425_v0, %v3397_v45  ;;  %v3436_v38 = vpop.eup %2417  ;;  %2419 = vrsqrt.f32 %v3438_v41  ;;  %vm1416_vm13 = vweird.f32 %v3425_v0 }
 0x23e   :  { %v1420_v16 = vmul.f32 %v3436_v38, %v3410_v52  ;;  %2421 = vrsqrt.f32 %v3449_v48  ;;  %vm3514_vm1 = vmor %vm1415_vm0, %vm1416_vm13  ;;  %vm1426_vm2 = vweird.f32 %v3436_v38  ;;  %v1578_v52 = vld [vmem:[%s3870_s2 + $0x48] sm:$0xff]  ;;  %vm1495_vm6 = vweird.f32 %v3438_v41 }
 0x23f   :  { %1252 = vadd.xlane.f32.xlu1 %v1251_v32  ;;  %v1438_v32 = vsel %vm1437_vm8, %v3363_v33, %v1434_v24  ;;  %v1393_v34 = vsub.f32 1.5, %v1392_v60  ;;  %v1411_v35 = vmul.f32 %v3425_v0, %v1410_v59  ;;  %v1463_v59 = vsub.f32 1.5, %v1462_v20  ;;  %vm3538_vm4 = vmor %vm1425_vm3, %vm1426_vm2 }
 0x240   :  { %v1603_v43 = vmul.f32 %v1579_v5, %v1438_v32 }
 0x241   :  { %v1394_v33 = vmul.f32 %v3399_v42, %v1393_v34  ;;  %v1412_v19 = vmul.f32 0.5, %v1411_v35  ;;  %v3458_v8 = vpop.permute.xlu2 %1701 }
 0x242   :  { %v1651_v60 = vmul.f32 %v1603_v43, %v3094_v61  ;;  %v1575_v61 = vld [vmem:[%s3870_s2 + $0x30] sm:$0xff] }
 0x243   :  { %v3469_v23 = vpop.eup %2419  ;;  %v1413_v5 = vsub.f32 1.5, %v1412_v19  ;;  %v1398_v34 = vsel %vm1397_vm11, %v3399_v42, %v1394_v33  ;;  %v4130_v42 = vld [vmem:[#allocation90_spill] sm:$0xff] }
 0x244   :  { %1255 = vadd.xlane.f32.xlu2 %v1254_v10  ;;  %v1421_v10 = vmul.f32 %v3436_v38, %v1420_v16  ;;  %v1675_v16 = vsub.f32 %v1627_v13, %v1651_v60  ;;  %v3480_v35 = vpop.eup %2421  ;;  %v1599_v20 = vmul.f32 %v1575_v61, %v1398_v34  ;;  %v1646_v33 = vmul.f32 %v3310_v25, %v4130_v42  ;;  %v1582_v34 = vld [vmem:[%s3870_s2 + $0x68] sm:$0xff] }
 0x245   :  { %1894 = vperm.xlu0 %2392, %v1672_v63   ;;  %v3455_v63 = vadd.f32 0.001, %v1293_v50  ;;  %v1490_v50 = vmul.f32 %v3469_v23, %v3438_v41  ;;  %v1414_v19 = vmul.f32 %v3425_v0, %v1413_v5  ;;  %v1440_v60 = vmul.f32 %v3480_v35, %v3449_v48 }
 0x246   :  { %v3462_v24 = vpop.xlane.xlu0 %1000  ;;  %v1422_v32 = vmul.f32 0.5, %v1421_v10  ;;  %v1295_v25 = vmul.f32 0.001953125, %v1271_v4  ;;  %v1670_v45 = vsub.f32 %v1622_v44, %v1646_v33  ;;  %v1623_v33 = vld [vmem:[%s3871_s3 + $0x30] sm:$0xff]  ;;  %vm1496_vm5 = vweird.f32 %v3469_v23 }
 0x247   :  { %2423 = vrsqrt.f32 %v3455_v63  ;;  %v1491_v37 = vmul.f32 %v3469_v23, %v1490_v50  ;;  %v1441_v42 = vmul.f32 %v3480_v35, %v1440_v60  ;;  %vm3589_vm7 = vmor %vm1495_vm6, %vm1496_vm5  ;;  %vm1446_vm8 = vweird.f32 %v3480_v35 }
 0x248   :  { %v1423_v10 = vsub.f32 1.5, %v1422_v32  ;;  %vm3620_vm11 = vmor %vm1445_vm9, %vm1446_vm8  ;;  %vm1455_vm12 = vweird.f32 %v3455_v63 }
 0x24a   :  { %v1424_v50 = vmul.f32 %v3436_v38, %v1423_v10  ;;  %v1296_v10 = vmul.f32 0.001953125, %v3290_v30 }
 0x24d   :  { %1741 = vperm.xlu0 %2392, %v1603_v43   ;;  %v1464_v43 = vmul.f32 %v3419_v28, %v1463_v59  ;;  %v3502_v32 = vpop.eup %2423  ;;  %v3529_v59 = vadd.f32 0.001, %v1295_v25  ;;  %v1428_v25 = vsel %vm3538_vm4, %v3436_v38, %v1424_v50  ;;  %v1630_v50 = vld [vmem:[%s3871_s3 + $0x68] sm:$0xff] }
 0x24e   :  { %v3518_v4 = vpop.xlane.xlu0 %1240  ;;  %vm1456_vm10 = vweird.f32 %v3502_v32 }
 0x24f   :  { %v1468_v5 = vsel %vm3498_vm15, %v3419_v28, %v1464_v43  ;;  %v1418_v28 = vsel %vm3514_vm1, %v3425_v0, %v1414_v19  ;;  %v1450_v43 = vmul.f32 %v3502_v32, %v3455_v63  ;;  %v1492_v0 = vmul.f32 0.5, %v1491_v37  ;;  %vm1457_vm13 = vmor %vm1455_vm12, %vm1456_vm10 }
 0x250   :  { %v1606_v51 = vmul.f32 %v1582_v34, %v1468_v5  ;;  %v1442_v5 = vmul.f32 0.5, %v1441_v42  ;;  %2425 = vrsqrt.f32 %v3529_v59  ;;  %v4139_v42 = vld [vmem:[#allocation12_spill] sm:$0xff]  ;;  %vm1475_vm2 = vweird.f32 %v3529_v59 }
 0x251   :  { %v1451_v37 = vmul.f32 %v3502_v32, %v1450_v43  ;;  %v1493_v61 = vsub.f32 1.5, %v1492_v0  ;;  %v3561_v43 = vadd.f32 0.001, %v1296_v10  ;;  %v1602_v0 = vmul.f32 %v1578_v52, %v1428_v25  ;;  %v4141_v25 = vld [vmem:[#allocation14_spill] sm:$0xff]  ;;  %v4142_v52 = vld [vmem:[#allocation15_spill] sm:$0xff] }
 0x252   :  { %v1654_v30 = vmul.f32 %v1606_v51, %v3124_v56  ;;  %v1443_v46 = vsub.f32 1.5, %v1442_v5 }
 0x253   :  { %2427 = vrsqrt.f32 %v3561_v43  ;;  %vm1485_vm5 = vweird.f32 %v3561_v43 }
 0x254   :  { %v1678_v47 = vsub.f32 %v1630_v50, %v1654_v30  ;;  %v4143_v30 = vld [vmem:[#allocation16_spill] sm:$0xff] }
 0x255   :  { %1909 = vperm.xlu0 %2392, %v1675_v16   ;;  %v1647_v16 = vmul.f32 %v1599_v20, %v3040_v62  ;;  %v1577_v62 = vld [vmem:[%s3870_s2 + $0x40] sm:$0xff]  ;;  %v2125_v5 = vmul.f32 %v3458_v8, %v4143_v30 }
 0x256   :  { %v3490_v49 = vpop.xlane.xlu2 %1006  ;;  %v1601_v60 = vmul.f32 %v1577_v62, %v1418_v28  ;;  %v4138_v28 = vld [vmem:[#allocation11_spill] sm:$0xff]  ;;  %v2123_v62 = vmul.f32 %v3460_v58, %v4139_v42  ;;  %v3572_v42 = vpop.eup %2425 }
 0x257   :  { %v1004_v13 = vpop.xlane.xlu1 %1003  ;;  %v1671_v19 = vsub.f32 %v1623_v33, %v1647_v16  ;;  %v1812_v33 = vmul.f32 %v3460_v58, %v4138_v28  ;;  %vm1476_vm1 = vweird.f32 %v3572_v42 }
 0x258   :  { %1721 = vperm.xlu1 %2393, %v1599_v20   ;;  %v4140_v20 = vld [vmem:[#allocation13_spill] sm:$0xff]  ;;  %vm3691_vm3 = vmor %vm1475_vm2, %vm1476_vm1 }
 0x259   :  { %v2124_v56 = vmul.f32 %v3460_v58, %v4140_v20  ;;  %v1444_v20 = vmul.f32 %v3480_v35, %v1443_v46 }
 0x25c   :  { %1884 = vperm.xlu2 %2394, %v1670_v45   ;;  %v4137_v45 = vld [vmem:[#allocation10_spill] sm:$0xff] }
 0x25d   :  { %1756 = vperm.xlu0 %2392, %v1606_v51   ;;  %v1811_v16 = vmul.f32 %v3460_v58, %v4137_v45  ;;  %v1494_v58 = vmul.f32 %v3469_v23, %v1493_v61 }
 0x25e   :  { %v3543_v44 = vpop.xlane.xlu2 %1246 }
 0x25f   :  { %v1244_v34 = vpop.xlane.xlu1 %1243 }
 0x260   :  { %v1276_v38 = vadd.f32 %v1244_v34, %v1004_v13  ;;  %1889 = vperm.xlu1 %2393, %v1671_v19   ;;  %v1649_v13 = vmul.f32 %v1601_v60, %v3078_v9  ;;  %v1452_v19 = vmul.f32 0.5, %v1451_v37  ;;  %v1813_v9 = vmul.f32 %v3458_v8, %v4141_v25 }
 0x261   :  { %v1865_v51 = vpop.permute.xlu0 %1864  ;;  %v1814_v37 = vmul.f32 %v3458_v8, %v4142_v52 }
 0x262   :  { %v1300_v45 = vmul.f32 0.001953125, %v1276_v38  ;;  %v1979_v3 = vadd.f32 %v1865_v51, %v1811_v16  ;;  %v1980_v15 = vadd.f32 %v1865_v51, %v1812_v33  ;;  %v2171_v34 = vadd.f32 %v2123_v62, %v1865_v51  ;;  %v1585_v38 = vld [vmem:[%s3870_s2 + $0x80] sm:$0xff] }
 0x263   :  { %v2172_v28 = vadd.f32 %v2124_v56, %v1865_v51  ;;  %v1453_v50 = vsub.f32 1.5, %v1452_v19  ;;  %v1470_v62 = vmul.f32 %v3572_v42, %v3529_v59  ;;  %v1275_v51 = vadd.f32 %v3518_v4, %v3462_v24  ;;  %v1580_v4 = vld [vmem:[%s3870_s2 + $0x58] sm:$0xff] }
 0x264   :  { %v3569_v10 = vadd.f32 0.001, %v1300_v45  ;;  %2027 = vst [vmem:[#allocation3 + $0x10] sm:$0xff] %v1979_v3  ;;  %1731 = vperm.xlu2 %2394, %v1601_v60   ;;  %v1274_v3 = vadd.f32 %v3430_v2, %v3401_v55  ;;  %v4144_v60 = vld [vmem:[#allocation17_spill] sm:$0xff]  ;;  %v1625_v55 = vld [vmem:[%s3871_s3 + $0x40] sm:$0xff]  ;;  %v1448_v24 = vsel %vm3620_vm11, %v3480_v35, %v1444_v20 }
 0x265   :  { %2028 = vst [vmem:[#allocation3 + $0x18] sm:$0xff] %v1980_v15  ;;  %1924 = vperm.xlu0 %2392, %v1678_v47   ;;  %v2126_v61 = vmul.f32 %v3458_v8, %v4144_v60  ;;  %v1498_v8 = vsel %vm3589_vm7, %v3469_v23, %v1494_v58  ;;  %v1673_v45 = vsub.f32 %v1625_v55, %v1649_v13  ;;  %v1299_v25 = vmul.f32 0.001953125, %v1275_v51 }
 0x266   :  { %2429 = vrsqrt.f32 %v3569_v10  ;;  %2220 = vst [vmem:[#allocation3 + $0x190] sm:$0xff] %v2171_v34  ;;  %v1870_v16 = vpop.permute.xlu2 %1869  ;;  %v1298_v56 = vmul.f32 0.001953125, %v1274_v3  ;;  %v1650_v23 = vmul.f32 %v1602_v0, %v3074_v14  ;;  %v3609_v34 = vpop.eup %2427  ;;  %v1609_v19 = vmul.f32 %v1585_v38, %v1498_v8  ;;  %v4149_v38 = vld [vmem:[#allocation18_spill] sm:$0xff] }
 0x267   :  { %2221 = vst [vmem:[#allocation3 + $0x198] sm:$0xff] %v2172_v28  ;;  %v1981_v15 = vadd.f32 %v1870_v16, %v1813_v9  ;;  %v1982_v47 = vadd.f32 %v1870_v16, %v1814_v37  ;;  %v2173_v41 = vadd.f32 %v2125_v5, %v1870_v16  ;;  %v2174_v2 = vadd.f32 %v2126_v61, %v1870_v16  ;;  %v1626_v28 = vld [vmem:[%s3871_s3 + $0x48] sm:$0xff]  ;;  %v1633_v5 = vld [vmem:[%s3871_s3 + $0x80] sm:$0xff] }
 0x268   :  { %1736 = vperm.xlu1 %2393, %v1602_v0   ;;  %v1471_v14 = vmul.f32 %v3572_v42, %v1470_v62  ;;  %v1454_v0 = vmul.f32 %v3502_v32, %v1453_v50  ;;  %v3634_v13 = vadd.f32 0.001, %v1298_v56  ;;  %v1674_v9 = vsub.f32 %v1626_v28, %v1650_v23  ;;  %v1581_v61 = vld [vmem:[%s3870_s2 + $0x60] sm:$0xff]  ;;  %v4150_v62 = vld [vmem:[#allocation19_spill] sm:$0xff]  ;;  %v4151_v56 = vld [vmem:[#allocation20_spill] sm:$0xff] }
 0x269   :  { %2029 = vst [vmem:[#allocation3 + $0x20] sm:$0xff] %v1981_v15  ;;  %v1480_v52 = vmul.f32 %v3609_v34, %v3561_v43  ;;  %v1657_v30 = vmul.f32 %v1609_v19, %v3162_v57  ;;  %v1604_v35 = vmul.f32 %v1580_v4, %v1448_v24  ;;  %v3651_v57 = vadd.f32 0.001, %v1299_v25  ;;  %v1586_v28 = vld [vmem:[%s3870_s2 + $0x88] sm:$0xff] }
 0x26a   :  { %2030 = vst [vmem:[#allocation3 + $0x28] sm:$0xff] %v1982_v47  ;;  %v1472_v3 = vmul.f32 0.5, %v1471_v14  ;;  %v1458_v63 = vsel %vm1457_vm13, %v3502_v32, %v1454_v0  ;;  %2431 = vrsqrt.f32 %v3634_v13  ;;  %v1277_v32 = vadd.f32 %v3543_v44, %v3490_v49  ;;  %v1628_v49 = vld [vmem:[%s3871_s3 + $0x58] sm:$0xff] }
 0x26b   :  { %2222 = vst [vmem:[#allocation3 + $0x1a0] sm:$0xff] %v2173_v41  ;;  %v1481_v16 = vmul.f32 %v3609_v34, %v1480_v52  ;;  %v1681_v47 = vsub.f32 %v1633_v5, %v1657_v30  ;;  %v1605_v41 = vmul.f32 %v1581_v61, %v1458_v63  ;;  %v1652_v55 = vmul.f32 %v1604_v35, %v3108_v40  ;;  %v4152_v40 = vld [vmem:[#allocation21_spill] sm:$0xff]  ;;  %v1629_v5 = vld [vmem:[%s3871_s3 + $0x60] sm:$0xff] }
 0x26c   :  { %v3615_v58 = vpop.eup %2429  ;;  %2223 = vst [vmem:[#allocation3 + $0x1a8] sm:$0xff] %v2174_v2  ;;  %1899 = vperm.xlu2 %2394, %v1673_v45   ;;  %v1473_v2 = vsub.f32 1.5, %v1472_v3  ;;  %2433 = vrsqrt.f32 %v3651_v57  ;;  %vm1525_vm15 = vweird.f32 %v3569_v10  ;;  %v1301_v24 = vmul.f32 0.001953125, %v1277_v32 }
 0x26d   :  { %v1520_v48 = vmul.f32 %v3615_v58, %v3569_v10  ;;  %1771 = vperm.xlu0 %2392, %v1609_v19   ;;  %vm1526_vm14 = vweird.f32 %v3615_v58  ;;  %v1482_v45 = vmul.f32 0.5, %v1481_v16  ;;  %v1588_v10 = vld [vmem:[%s3870_s2 + $0x98] sm:$0xff]  ;;  %v1676_v25 = vsub.f32 %v1628_v49, %v1652_v55  ;;  %v1583_v16 = vld [vmem:[%s3870_s2 + $0x70] sm:$0xff] }
 0x26e   :  { %v1707_v15 = vpop.permute.xlu2 %1706  ;;  %vm3670_vm0 = vmor %vm1525_vm15, %vm1526_vm14  ;;  %v1474_v52 = vmul.f32 %v3572_v42, %v1473_v2  ;;  %vm1486_vm4 = vweird.f32 %v3609_v34  ;;  %vm1505_vm8 = vweird.f32 %v3634_v13  ;;  %vm1515_vm11 = vweird.f32 %v3651_v57 }
 0x26f   :  { %v1521_v37 = vmul.f32 %v3615_v58, %v1520_v48  ;;  %v1815_v50 = vmul.f32 %v1707_v15, %v4149_v38  ;;  %v1816_v20 = vmul.f32 %v1707_v15, %v4150_v62  ;;  %v2127_v51 = vmul.f32 %v1707_v15, %v4151_v56  ;;  %vm1487_vm6 = vmor %vm1485_vm5, %vm1486_vm4 }
 0x270   :  { %1904 = vperm.xlu1 %2393, %v1674_v9   ;;  %v2128_v23 = vmul.f32 %v1707_v15, %v4152_v40  ;;  %v3668_v44 = vpop.eup %2431  ;;  %v1653_v9 = vmul.f32 %v1605_v41, %v3110_v27  ;;  %v1478_v63 = vsel %vm3691_vm3, %v3572_v42, %v1474_v52  ;;  %v1589_v27 = vld [vmem:[%s3870_s2 + $0xa0] sm:$0xff] }
 0x271   :  { %v1522_v60 = vmul.f32 0.5, %v1521_v37  ;;  %v1483_v37 = vsub.f32 1.5, %v1482_v45  ;;  %v1500_v30 = vmul.f32 %v3668_v44, %v3634_v13  ;;  %v1607_v42 = vmul.f32 %v1583_v16, %v1478_v63 }
 0x272   :  { %v3688_v3 = vpop.eup %2433  ;;  %vm1506_vm7 = vweird.f32 %v3668_v44 }
 0x273   :  { %v1523_v33 = vsub.f32 1.5, %v1522_v60  ;;  %v1677_v60 = vsub.f32 %v1629_v5, %v1653_v9  ;;  %v1501_v61 = vmul.f32 %v3668_v44, %v1500_v30  ;;  %v1510_v59 = vmul.f32 %v3688_v3, %v3651_v57  ;;  %vm1507_vm9 = vmor %vm1505_vm8, %vm1506_vm7  ;;  %v1634_v57 = vld [vmem:[%s3871_s3 + $0x88] sm:$0xff]  ;;  %v1635_v5 = vld [vmem:[%s3871_s3 + $0x90] sm:$0xff] }
 0x274   :  { %1746 = vperm.xlu2 %2394, %v1604_v35   ;;  %v1484_v15 = vmul.f32 %v3609_v34, %v1483_v37  ;;  %v1655_v38 = vmul.f32 %v1607_v42, %v3138_v1  ;;  %v1632_v1 = vld [vmem:[%s3871_s3 + $0x78] sm:$0xff]  ;;  %vm1516_vm10 = vweird.f32 %v3688_v3 }
 0x275   :  { %1939 = vperm.xlu0 %2392, %v1681_v47   ;;  %v1524_v8 = vmul.f32 %v3615_v58, %v1523_v33  ;;  %v1636_v47 = vld [vmem:[%s3871_s3 + $0x98] sm:$0xff]  ;;  %v1511_v55 = vmul.f32 %v3688_v3, %v1510_v59  ;;  %vm1517_vm12 = vmor %vm1515_vm11, %vm1516_vm10 }
 0x276   :  { %v1488_v32 = vsel %vm1487_vm6, %v3609_v34, %v1484_v15 }
 0x277   :  { %v1875_v19 = vpop.permute.xlu1 %1874  ;;  %v1528_v0 = vsel %vm3670_vm0, %v3615_v58, %v1524_v8  ;;  %v3695_v58 = vadd.f32 0.001, %v1301_v24  ;;  %v1512_v62 = vmul.f32 0.5, %v1511_v55 }
 0x278   :  { %v1983_v46 = vadd.f32 %v1875_v19, %v1815_v50  ;;  %v1984_v14 = vadd.f32 %v1875_v19, %v1816_v20  ;;  %v2175_v48 = vadd.f32 %v2127_v51, %v1875_v19  ;;  %1751 = vperm.xlu1 %2393, %v1605_v41   ;;  %v2176_v4 = vadd.f32 %v2128_v23, %v1875_v19  ;;  %v1631_v20 = vld [vmem:[%s3871_s3 + $0x70] sm:$0xff] }
 0x279   :  { %v1612_v35 = vmul.f32 %v1588_v10, %v1528_v0  ;;  %2435 = vrsqrt.f32 %v3695_v58  ;;  %v1502_v41 = vmul.f32 0.5, %v1501_v61  ;;  %v1679_v34 = vsub.f32 %v1631_v20, %v1655_v38  ;;  %v1587_v10 = vld [vmem:[%s3870_s2 + $0x90] sm:$0xff]  ;;  %v1637_v38 = vld [vmem:[%s3871_s3 + $0xa0] sm:$0xff] }
 0x27a   :  { %2031 = vst [vmem:[#allocation3 + $0x30] sm:$0xff] %v1983_v46  ;;  %v1513_v45 = vsub.f32 1.5, %v1512_v62  ;;  %vm1535_vm14 = vweird.f32 %v3695_v58 }
 0x27b   :  { %2032 = vst [vmem:[#allocation3 + $0x38] sm:$0xff] %v1984_v14  ;;  %v1660_v33 = vmul.f32 %v1612_v35, %v3229_v29  ;;  %v1584_v29 = vld [vmem:[%s3870_s2 + $0x78] sm:$0xff]  ;;  %v1503_v50 = vsub.f32 1.5, %v1502_v41 }
 0x27c   :  { %2224 = vst [vmem:[#allocation3 + $0x1b0] sm:$0xff] %v2175_v48  ;;  %1914 = vperm.xlu2 %2394, %v1676_v25   ;;  %v1608_v8 = vmul.f32 %v1584_v29, %v1488_v32  ;;  %v1514_v46 = vmul.f32 %v3688_v3, %v1513_v45  ;;  %v4160_v32 = vld [vmem:[#allocation25_spill] sm:$0xff]  ;;  %v1590_v45 = vld [vmem:[%s3870_s2 + $0xa8] sm:$0xff] }
 0x27d   :  { %2225 = vst [vmem:[#allocation3 + $0x1b8] sm:$0xff] %v2176_v4  ;;  %1786 = vperm.xlu0 %2392, %v1612_v35   ;;  %v1684_v2 = vsub.f32 %v1636_v47, %v1660_v33  ;;  %v1504_v40 = vmul.f32 %v3668_v44, %v1503_v50  ;;  %v4157_v33 = vld [vmem:[#allocation22_spill] sm:$0xff] }
 0x27e   :  { %v1656_v51 = vmul.f32 %v1608_v8, %v3148_v18  ;;  %v1518_v13 = vsel %vm1517_vm12, %v3688_v3, %v1514_v46 }
 0x27f   :  { %v2436_v43 = vpop.eup %2435  ;;  %v1508_v18 = vsel %vm1507_vm9, %v3668_v44, %v1504_v40  ;;  %v1611_v0 = vmul.f32 %v1587_v10, %v1518_v13  ;;  %v4161_v13 = vld [vmem:[#allocation34_spill] sm:$0xff] }
 0x280   :  { %1919 = vperm.xlu1 %2393, %v1677_v60   ;;  %v1530_v56 = vmul.f32 %v2436_v43, %v3695_v58  ;;  %v1680_v49 = vsub.f32 %v1632_v1, %v1656_v51  ;;  %v1610_v48 = vmul.f32 %v1586_v28, %v1508_v18  ;;  %vm1536_vm13 = vweird.f32 %v2436_v43  ;;  %v4158_v58 = vld [vmem:[#allocation23_spill] sm:$0xff] }
 0x281   :  { %v1659_v30 = vmul.f32 %v1611_v0, %v3212_v7  ;;  %vm1537_vm15 = vmor %vm1535_vm14, %vm1536_vm13  ;;  %v1712_v7 = vpop.permute.xlu1 %1711  ;;  %v1638_v28 = vld [vmem:[%s3871_s3 + $0xa8] sm:$0xff] }
 0x282   :  { %v1531_v19 = vmul.f32 %v2436_v43, %v1530_v56  ;;  %v1658_v25 = vmul.f32 %v1610_v48, %v3172_v26  ;;  %v1817_v15 = vmul.f32 %v1712_v7, %v4157_v33  ;;  %v1818_v47 = vmul.f32 %v1712_v7, %v4158_v58 }
 0x283   :  { %v1683_v26 = vsub.f32 %v1635_v5, %v1659_v30  ;;  %v2130_v29 = vmul.f32 %v1712_v7, %v4160_v32 }
 0x284   :  { %1761 = vperm.xlu2 %2394, %v1607_v42   ;;  %v1532_v14 = vmul.f32 0.5, %v1531_v19  ;;  %v1682_v37 = vsub.f32 %v1634_v57, %v1658_v25  ;;  %v4159_v42 = vld [vmem:[#allocation24_spill] sm:$0xff] }
 0x285   :  { %1954 = vperm.xlu0 %2392, %v1684_v2   ;;  %v2129_v41 = vmul.f32 %v1712_v7, %v4159_v42  ;;  %v1717_v2 = vpop.permute.xlu2 %1716 }
 0x286   :  { %v1533_v4 = vsub.f32 1.5, %v1532_v14 }
 0x288   :  { %1766 = vperm.xlu1 %2393, %v1608_v8   ;;  %v1534_v35 = vmul.f32 %v2436_v43, %v1533_v4 }
 0x28a   :  { %v1538_v3 = vsel %vm1537_vm15, %v2436_v43, %v1534_v35 }
 0x28b   :  { %v1613_v63 = vmul.f32 %v1589_v27, %v1538_v3  ;;  %v4164_v27 = vld [vmem:[#allocation28_spill] sm:$0xff] }
 0x28c   :  { %1929 = vperm.xlu2 %2394, %v1679_v34   ;;  %v1010_v23 = vpop.xlane.xlu0 %1009 }
 0x28d   :  { %v1661_v16 = vmul.f32 %v1613_v63, %v3227_v39 }
 0x28f   :  { %v1685_v34 = vsub.f32 %v1637_v38, %v1661_v16  ;;  %v4166_v38 = vld [vmem:[#allocation43_spill] sm:$0xff] }
 0x290   :  { %1934 = vperm.xlu1 %2393, %v1680_v49  }
 0x294   :  { %1776 = vperm.xlu2 %2394, %v1610_v48   ;;  %v1250_v44 = vpop.xlane.xlu0 %1249 }
 0x295   :  { %v1278_v24 = vadd.f32 %v1250_v44, %v1010_v23 }
 0x297   :  { %v1302_v9 = vmul.f32 0.001953125, %v1278_v24 }
 0x298   :  { %1781 = vperm.xlu1 %2393, %v1611_v0  }
 0x299   :  { %v1326_v52 = vadd.f32 0.001, %v1302_v9 }
 0x29b   :  { %2437 = vrsqrt.f32 %v1326_v52  ;;  %vm1545_vm1 = vweird.f32 %v1326_v52 }
 0x29c   :  { %1944 = vperm.xlu2 %2394, %v1682_v37  }
 0x2a0   :  { %1949 = vperm.xlu1 %2393, %v1683_v26   ;;  %v4163_v26 = vld [vmem:[#allocation27_spill] sm:$0xff] }
 0x2a1   :  { %v2438_v60 = vpop.eup %2437 }
 0x2a2   :  { %v1540_v61 = vmul.f32 %v2438_v60, %v1326_v52  ;;  %vm1546_vm0 = vweird.f32 %v2438_v60 }
 0x2a3   :  { %vm1547_vm2 = vmor %vm1545_vm1, %vm1546_vm0 }
 0x2a4   :  { %v1541_v59 = vmul.f32 %v2438_v60, %v1540_v61  ;;  %1791 = vperm.xlu2 %2394, %v1613_v63   ;;  %v4165_v63 = vld [vmem:[#allocation29_spill] sm:$0xff] }
 0x2a5   :  { %v2132_v7 = vmul.f32 %v1717_v2, %v4165_v63 }
 0x2a6   :  { %v1542_v55 = vmul.f32 0.5, %v1541_v59 }
 0x2a7   :  { %v1880_v8 = vpop.permute.xlu0 %1879 }
 0x2a8   :  { %v1543_v43 = vsub.f32 1.5, %v1542_v55  ;;  %v1985_v50 = vadd.f32 %v1880_v8, %v1817_v15  ;;  %v1986_v62 = vadd.f32 %v1880_v8, %v1818_v47  ;;  %v2177_v39 = vadd.f32 %v2129_v41, %v1880_v8 }
 0x2a9   :  { %v2178_v20 = vadd.f32 %v2130_v29, %v1880_v8 }
 0x2aa   :  { %2033 = vst [vmem:[#allocation3 + $0x40] sm:$0xff] %v1985_v50  ;;  %v1013_v56 = vpop.xlane.xlu1 %1012  ;;  %v1544_v51 = vmul.f32 %v2438_v60, %v1543_v43 }
 0x2ab   :  { %2034 = vst [vmem:[#allocation3 + $0x48] sm:$0xff] %v1986_v62 }
 0x2ac   :  { %2226 = vst [vmem:[#allocation3 + $0x1c0] sm:$0xff] %v2177_v39  ;;  %1959 = vperm.xlu2 %2394, %v1685_v34   ;;  %v1548_v1 = vsel %vm1547_vm2, %v2438_v60, %v1544_v51  ;;  %v2131_v60 = vmul.f32 %v1717_v2, %v4164_v27 }
 0x2ad   :  { %2227 = vst [vmem:[#allocation3 + $0x1c8] sm:$0xff] %v2178_v20  ;;  %v1614_v40 = vmul.f32 %v1590_v45, %v1548_v1 }
 0x2af   :  { %v1016_v23 = vpop.xlane.xlu2 %1015  ;;  %1796 = vperm.xlu1 %2393, %v1614_v40   ;;  %v1727_v19 = vpop.permute.xlu0 %1726  ;;  %v1662_v49 = vmul.f32 %v1614_v40, %v3299_v12 }
 0x2b0   :  { %v1823_v10 = vmul.f32 %v1727_v19, %v4161_v13  ;;  %v1824_v44 = vmul.f32 %v1727_v19, %v2791_v17  ;;  %v2135_v24 = vmul.f32 %v1727_v19, %v2804_v21  ;;  %v2136_v4 = vmul.f32 %v1727_v19, %v2806_v22  ;;  %v4162_v17 = vld [vmem:[#allocation26_spill] sm:$0xff]  ;;  %v4171_v13 = vld [vmem:[#allocation36_spill] sm:$0xff] }
 0x2b1   :  { %v1686_v48 = vsub.f32 %v1638_v28, %v1662_v49  ;;  %v1819_v21 = vmul.f32 %v1717_v2, %v4162_v17  ;;  %v1820_v22 = vmul.f32 %v1717_v2, %v4163_v26  ;;  %v4167_v2 = vld [vmem:[#allocation44_spill] sm:$0xff]  ;;  %v4175_v17 = vld [vmem:[#allocation31_spill] sm:$0xff] }
 0x2b2   :  { %v1253_v18 = vpop.xlane.xlu1 %1252  ;;  %v1591_v49 = vld [vmem:[%s3870_s2 + $0xb0] sm:$0xff] }
 0x2b3   :  { %v1279_v46 = vadd.f32 %v1253_v18, %v1013_v56 }
 0x2b5   :  { %v1303_v14 = vmul.f32 0.001953125, %v1279_v46 }
 0x2b7   :  { %v1327_v0 = vadd.f32 0.001, %v1303_v14  ;;  %v1256_v25 = vpop.xlane.xlu2 %1255  ;;  %1964 = vperm.xlu1 %2393, %v1686_v48   ;;  %v1895_v12 = vpop.permute.xlu0 %1894  ;;  %v4170_v14 = vld [vmem:[#allocation35_spill] sm:$0xff] }
 0x2b8   :  { %v1280_v9 = vadd.f32 %v1256_v25, %v1016_v23  ;;  %v1991_v57 = vadd.f32 %v1895_v12, %v1823_v10  ;;  %v1992_v52 = vadd.f32 %v1895_v12, %v1824_v44  ;;  %v2183_v37 = vadd.f32 %v2135_v24, %v1895_v12  ;;  %v4172_v44 = vld [vmem:[#allocation37_spill] sm:$0xff] }
 0x2b9   :  { %2439 = vrsqrt.f32 %v1327_v0  ;;  %v2184_v30 = vadd.f32 %v2136_v4, %v1895_v12  ;;  %vm1555_vm4 = vweird.f32 %v1327_v0  ;;  %v4173_v4 = vld [vmem:[#allocation38_spill] sm:$0xff] }
 0x2ba   :  { %v1304_v35 = vmul.f32 0.001953125, %v1280_v9  ;;  %2039 = vst [vmem:[#allocation3 + $0x70] sm:$0xff] %v1991_v57  ;;  %v1592_v57 = vld [vmem:[%s3870_s2 + $0xb8] sm:$0xff] }
 0x2bb   :  { %2040 = vst [vmem:[#allocation3 + $0x78] sm:$0xff] %v1992_v52 }
 0x2bc   :  { %v1328_v5 = vadd.f32 0.001, %v1304_v35  ;;  %2232 = vst [vmem:[#allocation3 + $0x1f0] sm:$0xff] %v2183_v37  ;;  %v4174_v35 = vld [vmem:[#allocation30_spill] sm:$0xff] }
 0x2bd   :  { %2233 = vst [vmem:[#allocation3 + $0x1f8] sm:$0xff] %v2184_v30 }
 0x2be   :  { %2441 = vrsqrt.f32 %v1328_v5  ;;  %vm1565_vm7 = vweird.f32 %v1328_v5 }
 0x2bf   :  { %v2440_v3 = vpop.eup %2439  ;;  %v1885_v61 = vpop.permute.xlu2 %1884 }
 0x2c0   :  { %v1742_v59 = vpop.permute.xlu0 %1741  ;;  %v1550_v16 = vmul.f32 %v2440_v3, %v1327_v0  ;;  %v1987_v33 = vadd.f32 %v1885_v61, %v1819_v21  ;;  %v1988_v15 = vadd.f32 %v1885_v61, %v1820_v22  ;;  %v2179_v58 = vadd.f32 %v2131_v60, %v1885_v61 }
 0x2c1   :  { %v2180_v47 = vadd.f32 %v2132_v7, %v1885_v61  ;;  %v1829_v43 = vmul.f32 %v1742_v59, %v4166_v38  ;;  %v1830_v50 = vmul.f32 %v1742_v59, %v4167_v2  ;;  %v2141_v62 = vmul.f32 %v1742_v59, %v2840_v53  ;;  %v1639_v7 = vld [vmem:[%s3871_s3 + $0xb0] sm:$0xff]  ;;  %v4177_v61 = vld [vmem:[#allocation33_spill] sm:$0xff] }
 0x2c2   :  { %v1551_v42 = vmul.f32 %v2440_v3, %v1550_v16  ;;  %2035 = vst [vmem:[#allocation3 + $0x50] sm:$0xff] %v1987_v33  ;;  %vm1556_vm3 = vweird.f32 %v2440_v3  ;;  %v2142_v56 = vmul.f32 %v1742_v59, %v2842_v54  ;;  %v1640_v2 = vld [vmem:[%s3871_s3 + $0xb8] sm:$0xff]  ;;  %s2470_s3 = smov [#allocation3]  }
 0x2c3   :  { %2036 = vst [vmem:[#allocation3 + $0x58] sm:$0xff] %v1988_v15  ;;  %vm1557_vm5 = vmor %vm1555_vm4, %vm1556_vm3  ;;  %s2270_s24 = sshll.u32 %s2470_s3, 4  ;;  %s2271_s24 = int_to_ptr.vmem [resolvable:$true] %s2270_s24 }
 0x2c4   :  { %v2442_v41 = vpop.eup %2441  ;;  %v1552_v55 = vmul.f32 0.5, %v1551_v42  ;;  %2228 = vst [vmem:[#allocation3 + $0x1d0] sm:$0xff] %v2179_v58  ;;  %v4178_v42 = vld [vmem:[#allocation53_spill] sm:$0xff] }
 0x2c5   :  { %v1560_v32 = vmul.f32 %v2442_v41, %v1328_v5  ;;  %2229 = vst [vmem:[#allocation3 + $0x1d8] sm:$0xff] %v2180_v47  ;;  %vm1566_vm6 = vweird.f32 %v2442_v41 }
 0x2c6   :  { %v1553_v29 = vsub.f32 1.5, %v1552_v55  ;;  %vm3784_vm8 = vmor %vm1565_vm7, %vm1566_vm6  ;;  %v4179_v55 = vld [vmem:[#allocation54_spill] sm:$0xff] }
 0x2c7   :  { %v1561_v8 = vmul.f32 %v2442_v41, %v1560_v32  ;;  %v1732_v39 = vpop.permute.xlu2 %1731 }
 0x2c8   :  { %v1910_v20 = vpop.permute.xlu0 %1909  ;;  %v1554_v19 = vmul.f32 %v2440_v3, %v1553_v29  ;;  %v1825_v48 = vmul.f32 %v1732_v39, %v4170_v14  ;;  %v1826_v10 = vmul.f32 %v1732_v39, %v4171_v13  ;;  %v2137_v24 = vmul.f32 %v1732_v39, %v4172_v44  ;;  %v4180_v29 = vld [vmem:[#allocation55_spill] sm:$0xff]  ;;  %v4187_v44 = vld [vmem:[#allocation40_spill] sm:$0xff] }
 0x2c9   :  { %v1562_v34 = vmul.f32 0.5, %v1561_v8  ;;  %v1997_v51 = vadd.f32 %v1910_v20, %v1829_v43  ;;  %v1998_v45 = vadd.f32 %v1910_v20, %v1830_v50  ;;  %v2189_v1 = vadd.f32 %v2141_v62, %v1910_v20  ;;  %v4181_v50 = vld [vmem:[#allocation56_spill] sm:$0xff]  ;;  %v4186_v13 = vld [vmem:[#allocation39_spill] sm:$0xff] }
 0x2ca   :  { %v2190_v40 = vadd.f32 %v2142_v56, %v1910_v20  ;;  %v1722_v23 = vpop.permute.xlu1 %1721  ;;  %v1558_v53 = vsel %vm1557_vm5, %v2440_v3, %v1554_v19  ;;  %v2138_v0 = vmul.f32 %v1732_v39, %v4173_v4  ;;  %v4176_v3 = vld [vmem:[#allocation32_spill] sm:$0xff]  ;;  %v4184_v19 = vld [vmem:[#allocation47_spill] sm:$0xff] }
 0x2cb   :  { %v1563_v18 = vsub.f32 1.5, %v1562_v34  ;;  %2045 = vst [vmem:[#allocation3 + $0xa0] sm:$0xff] %v1997_v51  ;;  %v1615_v54 = vmul.f32 %v1591_v49, %v1558_v53  ;;  %v1821_v5 = vmul.f32 %v1722_v23, %v4174_v35  ;;  %v1822_v21 = vmul.f32 %v1722_v23, %v4175_v17 }
 0x2cc   :  { %2046 = vst [vmem:[#allocation3 + $0xa8] sm:$0xff] %v1998_v45  ;;  %v2133_v27 = vmul.f32 %v1722_v23, %v4176_v3  ;;  %v2134_v59 = vmul.f32 %v1722_v23, %v4177_v61  ;;  %v4182_v45 = vld [vmem:[#allocation45_spill] sm:$0xff] }
 0x2cd   :  { %2238 = vst [vmem:[#allocation3 + $0x220] sm:$0xff] %v2189_v1  ;;  %v1564_v28 = vmul.f32 %v2442_v41, %v1563_v18  ;;  %1801 = vperm.xlu0 %2392, %v1615_v54   ;;  %v1663_v22 = vmul.f32 %v1615_v54, %v3344_v6  ;;  %v4185_v18 = vld [vmem:[#allocation48_spill] sm:$0xff] }
 0x2ce   :  { %2239 = vst [vmem:[#allocation3 + $0x228] sm:$0xff] %v2190_v40  ;;  %v4183_v40 = vld [vmem:[#allocation46_spill] sm:$0xff] }
 0x2cf   :  { %v1900_v25 = vpop.permute.xlu2 %1899  ;;  %v1568_v9 = vsel %vm3784_vm8, %v2442_v41, %v1564_v28  ;;  %v1687_v6 = vsub.f32 %v1639_v7, %v1663_v22  ;;  %v4192_v22 = vld [vmem:[#allocation68_spill] sm:$0xff] }
 0x2d0   :  { %v1757_v12 = vpop.permute.xlu0 %1756  ;;  %v1993_v52 = vadd.f32 %v1900_v25, %v1825_v48  ;;  %v1994_v37 = vadd.f32 %v1900_v25, %v1826_v10  ;;  %v2185_v30 = vadd.f32 %v2137_v24, %v1900_v25  ;;  %v2186_v26 = vadd.f32 %v2138_v0, %v1900_v25  ;;  %v4188_v0 = vld [vmem:[#allocation41_spill] sm:$0xff] }
 0x2d1   :  { %v1616_v60 = vmul.f32 %v1592_v57, %v1568_v9  ;;  %v1835_v41 = vmul.f32 %v1757_v12, %v4178_v42  ;;  %v1836_v32 = vmul.f32 %v1757_v12, %v4179_v55  ;;  %v2147_v8 = vmul.f32 %v1757_v12, %v4180_v29  ;;  %v4189_v9 = vld [vmem:[#allocation42_spill] sm:$0xff] }
 0x2d2   :  { %2041 = vst [vmem:[#allocation3 + $0x80] sm:$0xff] %v1993_v52  ;;  %v1890_v63 = vpop.permute.xlu1 %1889  ;;  %v2148_v62 = vmul.f32 %v1757_v12, %v4181_v50 }
 0x2d3   :  { %2042 = vst [vmem:[#allocation3 + $0x88] sm:$0xff] %v1994_v37  ;;  %v1989_v16 = vadd.f32 %v1890_v63, %v1821_v5  ;;  %v1990_v33 = vadd.f32 %v1890_v63, %v1822_v21  ;;  %1806 = vperm.xlu2 %2394, %v1616_v60   ;;  %v2181_v15 = vadd.f32 %v2133_v27, %v1890_v63  ;;  %v4190_v5 = vld [vmem:[#allocation64_spill] sm:$0xff]  ;;  %v4191_v21 = vld [vmem:[#allocation65_spill] sm:$0xff] }
 0x2d4   :  { %2234 = vst [vmem:[#allocation3 + $0x200] sm:$0xff] %v2185_v30  ;;  %v2182_v58 = vadd.f32 %v2134_v59, %v1890_v63  ;;  %v1664_v47 = vmul.f32 %v1616_v60, %v3354_v11  ;;  %v4193_v63 = vld [vmem:[#allocation71_spill] sm:$0xff] }
 0x2d5   :  { %2235 = vst [vmem:[#allocation3 + $0x208] sm:$0xff] %v2186_v26  ;;  %1969 = vperm.xlu0 %2392, %v1687_v6  }
 0x2d6   :  { %2037 = vst [vmem:[#allocation3 + $0x60] sm:$0xff] %v1989_v16  ;;  %v1688_v34 = vsub.f32 %v1640_v2, %v1664_v47  ;;  %v4195_v47 = vld [vmem:[#allocation58_spill] sm:$0xff] }
 0x2d7   :  { %2038 = vst [vmem:[#allocation3 + $0x68] sm:$0xff] %v1990_v33  ;;  %v1747_v38 = vpop.permute.xlu2 %1746 }
 0x2d8   :  { %v1925_v43 = vpop.permute.xlu0 %1924  ;;  %2230 = vst [vmem:[#allocation3 + $0x1e0] sm:$0xff] %v2181_v15  ;;  %v1831_v1 = vmul.f32 %v1747_v38, %v4182_v45  ;;  %v1832_v23 = vmul.f32 %v1747_v38, %v4183_v40  ;;  %v2143_v49 = vmul.f32 %v1747_v38, %v4184_v19  ;;  %v2144_v53 = vmul.f32 %v1747_v38, %v4185_v18 }
 0x2d9   :  { %2231 = vst [vmem:[#allocation3 + $0x1e8] sm:$0xff] %v2182_v58  ;;  %v2003_v39 = vadd.f32 %v1925_v43, %v1835_v41  ;;  %v2004_v11 = vadd.f32 %v1925_v43, %v1836_v32  ;;  %v2195_v20 = vadd.f32 %v2147_v8, %v1925_v43  ;;  %v2196_v56 = vadd.f32 %v2148_v62, %v1925_v43  ;;  %v4194_v58 = vld [vmem:[#allocation57_spill] sm:$0xff]  ;;  %v4196_v41 = vld [vmem:[#allocation59_spill] sm:$0xff]  ;;  %v4197_v32 = vld [vmem:[#allocation62_spill] sm:$0xff] }
 0x2da   :  { %v1737_v51 = vpop.permute.xlu1 %1736  ;;  %v4198_v62 = vld [vmem:[#allocation49_spill] sm:$0xff] }
 0x2db   :  { %2051 = vst [vmem:[#allocation3 + $0xd0] sm:$0xff] %v2003_v39  ;;  %1974 = vperm.xlu2 %2394, %v1688_v34   ;;  %v1827_v10 = vmul.f32 %v1737_v51, %v4186_v13  ;;  %v1828_v24 = vmul.f32 %v1737_v51, %v4187_v44  ;;  %v2139_v25 = vmul.f32 %v1737_v51, %v4188_v0  ;;  %v4200_v34 = vld [vmem:[#allocation51_spill] sm:$0xff] }
 0x2dc   :  { %2052 = vst [vmem:[#allocation3 + $0xd8] sm:$0xff] %v2004_v11  ;;  %v2140_v57 = vmul.f32 %v1737_v51, %v4189_v9  ;;  %v4199_v11 = vld [vmem:[#allocation50_spill] sm:$0xff]  ;;  %v4205_v9 = vld [vmem:[#allocation69_spill] sm:$0xff] }
 0x2dd   :  { %2244 = vst [vmem:[#allocation3 + $0x250] sm:$0xff] %v2195_v20 }
 0x2de   :  { %2245 = vst [vmem:[#allocation3 + $0x258] sm:$0xff] %v2196_v56 }
 0x2df   :  { %v1915_v54 = vpop.permute.xlu2 %1914 }
 0x2e0   :  { %v1772_v28 = vpop.permute.xlu0 %1771  ;;  %v1999_v46 = vadd.f32 %v1915_v54, %v1831_v1  ;;  %v2000_v14 = vadd.f32 %v1915_v54, %v1832_v23  ;;  %v2191_v48 = vadd.f32 %v2143_v49, %v1915_v54  ;;  %v2192_v4 = vadd.f32 %v2144_v53, %v1915_v54  ;;  %v4201_v1 = vld [vmem:[#allocation52_spill] sm:$0xff] }
 0x2e1   :  { %v1841_v17 = vmul.f32 %v1772_v28, %v4190_v5  ;;  %v1842_v26 = vmul.f32 %v1772_v28, %v4191_v21  ;;  %v2153_v3 = vmul.f32 %v1772_v28, %v4192_v22  ;;  %v2154_v7 = vmul.f32 %v1772_v28, %v4193_v63  ;;  %v4202_v53 = vld [vmem:[#allocation80_spill] sm:$0xff]  ;;  %v4203_v28 = vld [vmem:[#allocation81_spill] sm:$0xff]  ;;  %v4208_v5 = vld [vmem:[#allocation75_spill] sm:$0xff] }
 0x2e2   :  { %2047 = vst [vmem:[#allocation3 + $0xb0] sm:$0xff] %v1999_v46  ;;  %v1905_v12 = vpop.permute.xlu1 %1904 }
 0x2e3   :  { %2048 = vst [vmem:[#allocation3 + $0xb8] sm:$0xff] %v2000_v14  ;;  %v1995_v52 = vadd.f32 %v1905_v12, %v1827_v10  ;;  %v1996_v37 = vadd.f32 %v1905_v12, %v1828_v24  ;;  %v2187_v30 = vadd.f32 %v2139_v25, %v1905_v12  ;;  %v2188_v35 = vadd.f32 %v2140_v57, %v1905_v12  ;;  %v4204_v14 = vld [vmem:[#allocation83_spill] sm:$0xff] }
 0x2e4   :  { %2240 = vst [vmem:[#allocation3 + $0x230] sm:$0xff] %v2191_v48 }
 0x2e5   :  { %2241 = vst [vmem:[#allocation3 + $0x238] sm:$0xff] %v2192_v4 }
 0x2e6   :  { %2043 = vst [vmem:[#allocation3 + $0x90] sm:$0xff] %v1995_v52  ;;  %v4206_v52 = vld [vmem:[#allocation70_spill] sm:$0xff] }
 0x2e7   :  { %2044 = vst [vmem:[#allocation3 + $0x98] sm:$0xff] %v1996_v37  ;;  %v1762_v27 = vpop.permute.xlu2 %1761 }
 0x2e8   :  { %v1940_v60 = vpop.permute.xlu0 %1939  ;;  %2236 = vst [vmem:[#allocation3 + $0x210] sm:$0xff] %v2187_v30  ;;  %v1837_v6 = vmul.f32 %v1762_v27, %v4194_v58  ;;  %v1838_v42 = vmul.f32 %v1762_v27, %v4195_v47  ;;  %v2149_v55 = vmul.f32 %v1762_v27, %v4196_v41  ;;  %v2150_v29 = vmul.f32 %v1762_v27, %v4197_v32  ;;  %v4207_v30 = vld [vmem:[#allocation73_spill] sm:$0xff]  ;;  %v4213_v32 = vld [vmem:[#allocation86_spill] sm:$0xff] }
 0x2e9   :  { %2237 = vst [vmem:[#allocation3 + $0x218] sm:$0xff] %v2188_v35  ;;  %v2009_v61 = vadd.f32 %v1940_v60, %v1841_v17  ;;  %v2010_v59 = vadd.f32 %v1940_v60, %v1842_v26  ;;  %v2201_v16 = vadd.f32 %v2153_v3, %v1940_v60  ;;  %v2202_v33 = vadd.f32 %v2154_v7, %v1940_v60  ;;  %v4209_v3 = vld [vmem:[#allocation60_spill] sm:$0xff]  ;;  %v4210_v60 = vld [vmem:[#allocation61_spill] sm:$0xff] }
 0x2ea   :  { %v1752_v15 = vpop.permute.xlu1 %1751 }
 0x2eb   :  { %2057 = vst [vmem:[#allocation3 + $0x100] sm:$0xff] %v2009_v61  ;;  %v1833_v39 = vmul.f32 %v1752_v15, %v4198_v62  ;;  %v1834_v20 = vmul.f32 %v1752_v15, %v4199_v11  ;;  %v2145_v51 = vmul.f32 %v1752_v15, %v4200_v34  ;;  %v2146_v40 = vmul.f32 %v1752_v15, %v4201_v1  ;;  %v4211_v61 = vld [vmem:[#allocation63_spill] sm:$0xff]  ;;  %v4217_v34 = vld [vmem:[#allocation76_spill] sm:$0xff] }
 0x2ec   :  { %2058 = vst [vmem:[#allocation3 + $0x108] sm:$0xff] %v2010_v59 }
 0x2ed   :  { %2250 = vst [vmem:[#allocation3 + $0x280] sm:$0xff] %v2201_v16 }
 0x2ee   :  { %2251 = vst [vmem:[#allocation3 + $0x288] sm:$0xff] %v2202_v33  ;;  %v4212_v33 = vld [vmem:[#allocation66_spill] sm:$0xff] }
 0x2ef   :  { %v1930_v8 = vpop.permute.xlu2 %1929 }
 0x2f0   :  { %v1787_v38 = vpop.permute.xlu0 %1786  ;;  %v2005_v43 = vadd.f32 %v1930_v8, %v1837_v6  ;;  %v2006_v2 = vadd.f32 %v1930_v8, %v1838_v42  ;;  %v2197_v50 = vadd.f32 %v2149_v55, %v1930_v8  ;;  %v2198_v56 = vadd.f32 %v2150_v29, %v1930_v8  ;;  %v4214_v8 = vld [vmem:[#allocation87_spill] sm:$0xff] }
 0x2f1   :  { %v1847_v54 = vmul.f32 %v1787_v38, %v4202_v53  ;;  %v1848_v46 = vmul.f32 %v1787_v38, %v4203_v28  ;;  %v2159_v48 = vmul.f32 %v1787_v38, %v4204_v14  ;;  %v2160_v44 = vmul.f32 %v1787_v38, %v4115_v31 }
 0x2f2   :  { %2053 = vst [vmem:[#allocation3 + $0xe0] sm:$0xff] %v2005_v43  ;;  %v1920_v45 = vpop.permute.xlu1 %1919  ;;  %v4215_v43 = vld [vmem:[#allocation88_spill] sm:$0xff] }
 0x2f3   :  { %2054 = vst [vmem:[#allocation3 + $0xe8] sm:$0xff] %v2006_v2  ;;  %v2001_v23 = vadd.f32 %v1920_v45, %v1833_v39  ;;  %v2002_v19 = vadd.f32 %v1920_v45, %v1834_v20  ;;  %v2193_v49 = vadd.f32 %v2145_v51, %v1920_v45  ;;  %v2194_v18 = vadd.f32 %v2146_v40, %v1920_v45  ;;  %v4218_v45 = vld [vmem:[#allocation77_spill] sm:$0xff] }
 0x2f4   :  { %2246 = vst [vmem:[#allocation3 + $0x260] sm:$0xff] %v2197_v50  ;;  %v4216_v50 = vld [vmem:[#allocation89_spill] sm:$0xff] }
 0x2f5   :  { %2247 = vst [vmem:[#allocation3 + $0x268] sm:$0xff] %v2198_v56 }
 0x2f6   :  { %2049 = vst [vmem:[#allocation3 + $0xc0] sm:$0xff] %v2001_v23  ;;  %v4219_v23 = vld [vmem:[#allocation78_spill] sm:$0xff] }
 0x2f7   :  { %2050 = vst [vmem:[#allocation3 + $0xc8] sm:$0xff] %v2002_v19  ;;  %v1777_v13 = vpop.permute.xlu2 %1776 }
 0x2f8   :  { %v1955_v10 = vpop.permute.xlu0 %1954  ;;  %2242 = vst [vmem:[#allocation3 + $0x240] sm:$0xff] %v2193_v49  ;;  %v1843_v57 = vmul.f32 %v1777_v13, %v4205_v9  ;;  %v1844_v37 = vmul.f32 %v1777_v13, %v4206_v52  ;;  %v2155_v35 = vmul.f32 %v1777_v13, %v4207_v30  ;;  %v2156_v17 = vmul.f32 %v1777_v13, %v4208_v5  ;;  %v4221_v13 = vld [vmem:[#allocation91_spill] sm:$0xff] }
 0x2f9   :  { %2243 = vst [vmem:[#allocation3 + $0x248] sm:$0xff] %v2194_v18  ;;  %v2015_v24 = vadd.f32 %v1955_v10, %v1847_v54  ;;  %v2016_v4 = vadd.f32 %v1955_v10, %v1848_v46  ;;  %v2207_v0 = vadd.f32 %v2159_v48, %v1955_v10  ;;  %v2208_v25 = vadd.f32 %v2160_v44, %v1955_v10  ;;  %v4220_v18 = vld [vmem:[#allocation79_spill] sm:$0xff]  ;;  %v4222_v44 = vld [vmem:[#allocation92_spill] sm:$0xff] }
 0x2fa   :  { %v1767_v12 = vpop.permute.xlu1 %1766 }
 0x2fb   :  { %2063 = vst [vmem:[#allocation3 + $0x130] sm:$0xff] %v2015_v24  ;;  %v1839_v27 = vmul.f32 %v1767_v12, %v4209_v3  ;;  %v1840_v63 = vmul.f32 %v1767_v12, %v4210_v60  ;;  %v2151_v59 = vmul.f32 %v1767_v12, %v4211_v61  ;;  %v2152_v15 = vmul.f32 %v1767_v12, %v4212_v33 }
 0x2fc   :  { %2064 = vst [vmem:[#allocation3 + $0x138] sm:$0xff] %v2016_v4  ;;  %v4223_v4 = vld [vmem:[#allocation93_spill] sm:$0xff] }
 0x2fd   :  { %2256 = vst [vmem:[#allocation3 + $0x2b0] sm:$0xff] %v2207_v0 }
 0x2fe   :  { %2257 = vst [vmem:[#allocation3 + $0x2b8] sm:$0xff] %v2208_v25  ;;  %v4224_v25 = vld [vmem:[#allocation94_spill] sm:$0xff] }
 0x2ff   :  { %v1945_v31 = vpop.permute.xlu2 %1944 }
 0x300   :  { %v2011_v21 = vadd.f32 %v1945_v31, %v1843_v57  ;;  %v2012_v26 = vadd.f32 %v1945_v31, %v1844_v37  ;;  %v2203_v22 = vadd.f32 %v2155_v35, %v1945_v31  ;;  %v2204_v7 = vadd.f32 %v2156_v17, %v1945_v31  ;;  %v4225_v17 = vld [vmem:[#allocation100_spill] sm:$0xff] }
 0x302   :  { %2059 = vst [vmem:[#allocation3 + $0x110] sm:$0xff] %v2011_v21  ;;  %v1935_v16 = vpop.permute.xlu1 %1934  ;;  %v4226_v21 = vld [vmem:[#allocation101_spill] sm:$0xff] }
 0x303   :  { %2060 = vst [vmem:[#allocation3 + $0x118] sm:$0xff] %v2012_v26  ;;  %v2007_v58 = vadd.f32 %v1935_v16, %v1839_v27  ;;  %v2008_v6 = vadd.f32 %v1935_v16, %v1840_v63  ;;  %v2199_v47 = vadd.f32 %v2151_v59, %v1935_v16  ;;  %v2200_v42 = vadd.f32 %v2152_v15, %v1935_v16  ;;  %v4228_v16 = vld [vmem:[#allocation95_spill] sm:$0xff]  ;;  %v4229_v15 = vld [vmem:[#allocation96_spill] sm:$0xff] }
 0x304   :  { %2252 = vst [vmem:[#allocation3 + $0x290] sm:$0xff] %v2203_v22  ;;  %v4227_v22 = vld [vmem:[#allocation102_spill] sm:$0xff] }
 0x305   :  { %2253 = vst [vmem:[#allocation3 + $0x298] sm:$0xff] %v2204_v7 }
 0x306   :  { %2055 = vst [vmem:[#allocation3 + $0xf0] sm:$0xff] %v2007_v58  ;;  %v4230_v58 = vld [vmem:[#allocation97_spill] sm:$0xff] }
 0x307   :  { %2056 = vst [vmem:[#allocation3 + $0xf8] sm:$0xff] %v2008_v6  ;;  %v1792_v41 = vpop.permute.xlu2 %1791 }
 0x308   :  { %2248 = vst [vmem:[#allocation3 + $0x270] sm:$0xff] %v2199_v47  ;;  %v1849_v29 = vmul.f32 %v1792_v41, %v4213_v32  ;;  %v1850_v38 = vmul.f32 %v1792_v41, %v4214_v8  ;;  %v2161_v2 = vmul.f32 %v1792_v41, %v4215_v43  ;;  %v2162_v62 = vmul.f32 %v1792_v41, %v4216_v50  ;;  %v4231_v47 = vld [vmem:[#allocation98_spill] sm:$0xff] }
 0x309   :  { %2249 = vst [vmem:[#allocation3 + $0x278] sm:$0xff] %v2200_v42 }
 0x30a   :  { %v1782_v55 = vpop.permute.xlu1 %1781 }
 0x30b   :  { %v1845_v51 = vmul.f32 %v1782_v55, %v4217_v34  ;;  %v1846_v1 = vmul.f32 %v1782_v55, %v4218_v45  ;;  %v2157_v19 = vmul.f32 %v1782_v55, %v4219_v23  ;;  %v2158_v53 = vmul.f32 %v1782_v55, %v4220_v18 }
 0x30f   :  { %v1960_v39 = vpop.permute.xlu2 %1959 }
 0x310   :  { %v2017_v11 = vadd.f32 %v1960_v39, %v1849_v29  ;;  %v2018_v20 = vadd.f32 %v1960_v39, %v1850_v38  ;;  %v2209_v56 = vadd.f32 %v2161_v2, %v1960_v39  ;;  %v2210_v40 = vadd.f32 %v2162_v62, %v1960_v39 }
 0x312   :  { %2065 = vst [vmem:[#allocation3 + $0x140] sm:$0xff] %v2017_v11  ;;  %v1950_v49 = vpop.permute.xlu1 %1949 }
 0x313   :  { %2066 = vst [vmem:[#allocation3 + $0x148] sm:$0xff] %v2018_v20  ;;  %v2013_v54 = vadd.f32 %v1950_v49, %v1845_v51  ;;  %v2014_v28 = vadd.f32 %v1950_v49, %v1846_v1  ;;  %v2205_v46 = vadd.f32 %v2157_v19, %v1950_v49  ;;  %v2206_v14 = vadd.f32 %v2158_v53, %v1950_v49 }
 0x314   :  { %2258 = vst [vmem:[#allocation3 + $0x2c0] sm:$0xff] %v2209_v56 }
 0x315   :  { %2259 = vst [vmem:[#allocation3 + $0x2c8] sm:$0xff] %v2210_v40 }
 0x316   :  { %2061 = vst [vmem:[#allocation3 + $0x120] sm:$0xff] %v2013_v54 }
 0x317   :  { %2062 = vst [vmem:[#allocation3 + $0x128] sm:$0xff] %v2014_v28 }
 0x318   :  { %2254 = vst [vmem:[#allocation3 + $0x2a0] sm:$0xff] %v2205_v46 }
 0x319   :  { %2255 = vst [vmem:[#allocation3 + $0x2a8] sm:$0xff] %v2206_v14 }
 0x321   :  { %v1797_v48 = vpop.permute.xlu1 %1796 }
 0x322   :  { %v1851_v10 = vmul.f32 %v1797_v48, %v4221_v13  ;;  %v1852_v24 = vmul.f32 %v1797_v48, %v4222_v44  ;;  %v2163_v0 = vmul.f32 %v1797_v48, %v4223_v4  ;;  %v2164_v12 = vmul.f32 %v1797_v48, %v4224_v25 }
 0x329   :  { %v1965_v9 = vpop.permute.xlu1 %1964 }
 0x32a   :  { %v2019_v57 = vadd.f32 %v1965_v9, %v1851_v10  ;;  %v2020_v52 = vadd.f32 %v1965_v9, %v1852_v24  ;;  %v2211_v37 = vadd.f32 %v2163_v0, %v1965_v9  ;;  %v2212_v30 = vadd.f32 %v2164_v12, %v1965_v9 }
 0x32c   :  { %2067 = vst [vmem:[#allocation3 + $0x150] sm:$0xff] %v2019_v57 }
 0x32d   :  { %2068 = vst [vmem:[#allocation3 + $0x158] sm:$0xff] %v2020_v52  ;;  %v1807_v35 = vpop.permute.xlu2 %1806 }
 0x32e   :  { %2260 = vst [vmem:[#allocation3 + $0x2d0] sm:$0xff] %v2211_v37  ;;  %v1855_v5 = vmul.f32 %v1807_v35, %v4124_v36  ;;  %v1856_v31 = vmul.f32 %v1807_v35, %v4225_v17  ;;  %v2167_v26 = vmul.f32 %v1807_v35, %v4226_v21  ;;  %v2168_v3 = vmul.f32 %v1807_v35, %v4227_v22 }
 0x32f   :  { %2261 = vst [vmem:[#allocation3 + $0x2d8] sm:$0xff] %v2212_v30 }
 0x335   :  { %v1975_v27 = vpop.permute.xlu2 %1974 }
 0x336   :  { %v2023_v60 = vadd.f32 %v1975_v27, %v1855_v5  ;;  %v2024_v63 = vadd.f32 %v1975_v27, %v1856_v31  ;;  %v2215_v7 = vadd.f32 %v2167_v26, %v1975_v27  ;;  %v2216_v61 = vadd.f32 %v2168_v3, %v1975_v27 }
 0x338   :  { %2071 = vst [vmem:[#allocation3 + $0x170] sm:$0xff] %v2023_v60 }
 0x339   :  { %2072 = vst [vmem:[#allocation3 + $0x178] sm:$0xff] %v2024_v63 }
 0x33a   :  { %2264 = vst [vmem:[#allocation3 + $0x2f0] sm:$0xff] %v2215_v7 }
 0x33b   :  { %2265 = vst [vmem:[#allocation3 + $0x2f8] sm:$0xff] %v2216_v61 }
 0x33f   :  { %v1802_v59 = vpop.permute.xlu0 %1801 }
 0x340   :  { %v1853_v33 = vmul.f32 %v1802_v59, %v4228_v16  ;;  %v1854_v36 = vmul.f32 %v1802_v59, %v4229_v15  ;;  %v2165_v6 = vmul.f32 %v1802_v59, %v4230_v58  ;;  %v2166_v42 = vmul.f32 %v1802_v59, %v4231_v47 }
 0x347   :  { %v1970_v41 = vpop.permute.xlu0 %1969 }
 0x348   :  { %v2021_v55 = vadd.f32 %v1970_v41, %v1853_v33  ;;  %v2022_v32 = vadd.f32 %v1970_v41, %v1854_v36  ;;  %v2213_v29 = vadd.f32 %v2165_v6, %v1970_v41  ;;  %v2214_v8 = vadd.f32 %v2166_v42, %v1970_v41 }
 0x34a   :  { %2069 = vst [vmem:[#allocation3 + $0x160] sm:$0xff] %v2021_v55 }
 0x34b   :  { %2070 = vst [vmem:[#allocation3 + $0x168] sm:$0xff] %v2022_v32 }
 0x34c   :  { %2262 = vst [vmem:[#allocation3 + $0x2e0] sm:$0xff] %v2213_v29 }
 0x34d   :  { %2263 = vst [vmem:[#allocation3 + $0x2e8] sm:$0xff] %v2214_v8 }
 0x34e   :  { %2278 = dma.vmem_to_hbm [thread:$0]  %s2271_s24, 12288, %s2273_s27, [#allocation4], %s2471_s28, %s2471_s28, %s2472_s29  }
 0x34f   :  { %2467 = dma.done.wait [#allocation4], 12288  }
 0x350   :  { %2468 = vsyncadd [#allocation4], 4294955008 }
 0x351   :  { %2283 = vsyncpa [#allocation4], 1 }

</bundles_post_ra>
